<compile_context>
chip_gen: v7x
topology: tpu7x:2x2x1
jax: 0.10.0
libtpu: 0.0.40
codegen_flags: <defaults>
</compile_context>

<pallas_src>
import functools
import math

import jax
import jax.numpy as jnp
from jax import lax
from jax.experimental import pallas as pl
from jax.experimental.pallas import tpu as pltpu

LN_EPS = 1e-5
LANE = 128


def _layernorm_f32(h, gamma, beta):
    mu = jnp.mean(h, axis=-1, keepdims=True)
    var = jnp.mean((h - mu) ** 2, axis=-1, keepdims=True)
    return (h - mu) * lax.rsqrt(var + LN_EPS) * gamma + beta


def encoder_fc_kernel(
    x_ref,        # (BT, S, D)  f32
    wq_ref,       # (D, D)      bf16
    wk_ref,       # (D, D)      bf16
    wv_ref,       # (D, D)      bf16
    bq_ref,       # (1, D)      f32
    bk_ref,       # (1, D)      f32
    bv_ref,       # (1, D)      f32
    wo_ref,       # (D, D)      bf16
    bo_ref,       # (1, D)      f32
    g1_ref,       # (1, D)      f32   norm1 gamma
    be1_ref,      # (1, D)      f32   norm1 beta
    w1_ref,       # (D, F)      bf16
    b1_ref,       # (1, F)      f32
    w2_ref,       # (F, D)      bf16
    b2_ref,       # (1, D)      f32
    g2_ref,       # (1, D)      f32   norm2 gamma
    be2_ref,      # (1, D)      f32   norm2 beta
    wfc_ref,      # (D, OP)     bf16  (O lane-padded to OP)
    bfc_ref,      # (1, OP)     f32
    out_ref,      # (BT, S, OP) f32
):
    x = x_ref[...]                                   # (BT, S, D) f32
    BT, S, D = x.shape
    M = BT * S
    OP = out_ref.shape[-1]

    x2d = x.reshape(M, D)                            # flatten batch into M
    xb = x2d.astype(jnp.bfloat16)

    # ---- single-head self-attention (projections: bf16 MXU, f32 acc) -----
    q = jnp.dot(xb, wq_ref[...], preferred_element_type=jnp.float32) + bq_ref[0]
    k = jnp.dot(xb, wk_ref[...], preferred_element_type=jnp.float32) + bk_ref[0]
    v = jnp.dot(xb, wv_ref[...], preferred_element_type=jnp.float32) + bv_ref[0]

    q3 = q.reshape(BT, S, D)
    k3 = k.reshape(BT, S, D)
    v3 = v.reshape(BT, S, D)

    # contract D directly; no explicit k.T (keeps XLU free for reductions)
    scores = jnp.einsum("bsd,btd->bst", q3, k3,
                        preferred_element_type=jnp.float32)
    scores = scores * (1.0 / math.sqrt(D))
    scores = scores - jnp.max(scores, axis=-1, keepdims=True)
    e = jnp.exp(scores)
    attn = e * pl.reciprocal(jnp.sum(e, axis=-1, keepdims=True), approx=True)
    ctx = jnp.einsum("bst,btd->bsd", attn, v3,
                     preferred_element_type=jnp.float32)
    ctx2d = ctx.reshape(M, D)

    sa = jnp.dot(ctx2d.astype(jnp.bfloat16), wo_ref[...],
                 preferred_element_type=jnp.float32) + bo_ref[0]

    # ---- residual + LayerNorm 1 (f32) -------------------------------------
    x1 = _layernorm_f32(x2d + sa, g1_ref[0], be1_ref[0])

    # ---- feed-forward (ReLU), bf16 operands, f32 accumulation --------------
    h = jnp.dot(x1.astype(jnp.bfloat16), w1_ref[...],
                preferred_element_type=jnp.float32) + b1_ref[0]
    h = jnp.maximum(h, 0.0)
    ff = jnp.dot(h.astype(jnp.bfloat16), w2_ref[...],
                 preferred_element_type=jnp.float32) + b2_ref[0]

    # ---- residual + LayerNorm 2 (f32) -------------------------------------
    x2 = _layernorm_f32(x1 + ff, g2_ref[0], be2_ref[0])

    # ---- final Linear (lane-padded) + sigmoid via tanh (EUP) ---------------
    logits = jnp.dot(x2.astype(jnp.bfloat16), wfc_ref[...],
                     preferred_element_type=jnp.float32) + bfc_ref[0]
    out = 0.5 * (jnp.tanh(0.5 * logits) + 1.0)       # == sigmoid(logits)
    out_ref[...] = out.reshape(BT, S, OP)


def _choose_batch_tile(B, S):
    """BT*S ~ 256 matmul rows per program, but keep >=2 programs when B > 1
    so both v7x TensorCores are used."""
    target_rows = 256
    bt = max(1, min(B, target_rows // max(S, 1)))
    if B > 1 and -(-B // bt) < 2:
        bt = -(-B // 2)
    return bt


@functools.partial(jax.jit, static_argnames=("out_size",))
def bug_localization_forward(x_sbd, params, *, out_size):
    """x_sbd: (S, B, D) float32, PyTorch (seq, batch, d_model) convention."""
    # TODO(synk): the kernel consumes (B, S, D); the transposes below are
    # separate XLA ops (negligible at these sizes).
    x = jnp.transpose(x_sbd, (1, 0, 2))              # (B, S, D)
    B, S, D = x.shape
    F = params["w1_t"].shape[-1]
    OP = params["wfc_t"].shape[-1]                   # lane-padded output dim

    BT = _choose_batch_tile(B, S)
    NT = -(-B // BT)
    B_pad = NT * BT
    if B_pad != B:
        x = jnp.pad(x, ((0, B_pad - B), (0, 0), (0, 0)))

    full = lambda shape: pl.BlockSpec(shape, lambda b: tuple(0 for _ in shape))

    # ---- advisory cost estimate -------------------------------------------
    flops = 2 * B_pad * S * (4 * D * D + 2 * S * D + 2 * D * F + D * OP)
    transcendentals = B_pad * S * (S + OP)
    weight_bytes = 2 * (4 * D * D + 2 * D * F + D * OP)          # bf16
    bias_bytes = 4 * (9 * D + F + OP)                            # f32
    bytes_accessed = (B_pad * S * D * 4 + B_pad * S * OP * 4
                      + weight_bytes + bias_bytes)

    # ---- VMEM budget (blocks are double-buffered by default) ---------------
    block_bytes = BT * S * D * 4 + BT * S * OP * 4
    vmem_need = 2 * (weight_bytes + bias_bytes + block_bytes)
    vmem_limit = int(min(max(2 * vmem_need, 32 * 1024 * 1024),
                         48 * 1024 * 1024))

    out = pl.pallas_call(
        encoder_fc_kernel,
        out_shape=jax.ShapeDtypeStruct((B_pad, S, OP), jnp.float32),
        grid=(NT,),
        in_specs=[
            pl.BlockSpec((BT, S, D), lambda b: (b, 0, 0)),   # x
            full((D, D)), full((D, D)), full((D, D)),        # wq, wk, wv
            full((1, D)), full((1, D)), full((1, D)),        # bq, bk, bv
            full((D, D)), full((1, D)),                      # wo, bo
            full((1, D)), full((1, D)),                      # norm1 gamma/beta
            full((D, F)), full((1, F)),                      # w1, b1
            full((F, D)), full((1, D)),                      # w2, b2
            full((1, D)), full((1, D)),                      # norm2 gamma/beta
            full((D, OP)), full((1, OP)),                    # wfc, bfc
        ],
        out_specs=pl.BlockSpec((BT, S, OP), lambda b: (b, 0, 0)),
        compiler_params=pltpu.CompilerParams(
            dimension_semantics=("parallel",),
            vmem_limit_bytes=vmem_limit,
        ),
        cost_estimate=pl.CostEstimate(
            flops=flops,
            transcendentals=transcendentals,
            bytes_accessed=bytes_accessed,
        ),
    )(
        x,
        params["wq_t"], params["wk_t"], params["wv_t"],
        params["bq"], params["bk"], params["bv"],
        params["wo_t"], params["bo"],
        params["g1"], params["be1"],
        params["w1_t"], params["b1"],
        params["w2_t"], params["b2"],
        params["g2"], params["be2"],
        params["wfc_t"], params["bfc"],
    )
    out = out[:B, :, :out_size]
    return jnp.transpose(out, (1, 0, 2))             # back to (S, B, O)


def make_params(key, d_model, d_ff, out_size):
    """f32 master parameters (used directly by the pure-JAX reference)."""
    ks = jax.random.split(key, 12)
    scale = 0.05
    nrm = lambda k, shape: scale * jax.random.normal(k, shape, jnp.float32)
    return {
        # MultiheadAttention (nhead=1): fused in_proj split into q/k/v blocks
        "wq_t": nrm(ks[0], (d_model, d_model)),
        "wk_t": nrm(ks[1], (d_model, d_model)),
        "wv_t": nrm(ks[2], (d_model, d_model)),
        "bq":   nrm(ks[3], (1, d_model)),
        "bk":   nrm(ks[4], (1, d_model)),
        "bv":   nrm(ks[5], (1, d_model)),
        "wo_t": nrm(ks[6], (d_model, d_model)),
        "bo":   nrm(ks[7], (1, d_model)),
        "g1":   jnp.ones((1, d_model), jnp.float32),
        "be1":  jnp.zeros((1, d_model), jnp.float32),
        "w1_t": nrm(ks[8], (d_model, d_ff)),
        "b1":   nrm(ks[9], (1, d_ff)),
        "w2_t": nrm(ks[10], (d_ff, d_model)),
        "b2":   nrm(ks[11], (1, d_model)),
        "g2":   jnp.ones((1, d_model), jnp.float32),
        "be2":  jnp.zeros((1, d_model), jnp.float32),
        "wfc_t": nrm(jax.random.fold_in(key, 99), (d_model, out_size)),
        "bfc":   nrm(jax.random.fold_in(key, 100), (1, out_size)),
    }


def prepare_kernel_params(p, out_pad):
    """bf16-cast the large matmul weights and lane-pad the output head."""
    kp = dict(p)
    for name in ("wq_t", "wk_t", "wv_t", "wo_t", "w1_t", "w2_t"):
        kp[name] = p[name].astype(jnp.bfloat16)
    o = p["wfc_t"].shape[-1]
    kp["wfc_t"] = jnp.pad(p["wfc_t"], ((0, 0), (0, out_pad - o))
                          ).astype(jnp.bfloat16)
    kp["bfc"] = jnp.pad(p["bfc"], ((0, 0), (0, out_pad - o)))
    return kp


def reference_forward(x_sbd, p):
    """Pure-JAX f32 reference mirroring PyTorch TransformerEncoderLayer (eval)."""
    x = x_sbd                                        # (S, B, D)
    D = x.shape[-1]
    q = x @ p["wq_t"] + p["bq"][0]
    k = x @ p["wk_t"] + p["bk"][0]
    v = x @ p["wv_t"] + p["bv"][0]
    scores = jnp.einsum("sbd,tbd->bst", q, k) / jnp.sqrt(jnp.float32(D))
    attn = jax.nn.softmax(scores, axis=-1)
    ctx = jnp.einsum("bst,tbd->sbd", attn, v)
    sa = ctx @ p["wo_t"] + p["bo"][0]

    def ln(h, g, b):
        mu = jnp.mean(h, axis=-1, keepdims=True)
        var = jnp.mean((h - mu) ** 2, axis=-1, keepdims=True)
        return (h - mu) * lax.rsqrt(var + LN_EPS) * g[0] + b[0]

    x1 = ln(x + sa, p["g1"], p["be1"])
    h = jnp.maximum(x1 @ p["w1_t"] + p["b1"][0], 0.0)
    ff = h @ p["w2_t"] + p["b2"][0]
    x2 = ln(x1 + ff, p["g2"], p["be2"])
    return jax.nn.sigmoid(x2 @ p["wfc_t"] + p["bfc"][0])


if __name__ == "__main__":
    SEQ, BATCH, D_MODEL, D_FF, OUT = 8, 2, 32, 2048, 8   # nn defaults: d_ff=2048
    OUT_PAD = -(-OUT // LANE) * LANE                     # lane-dense output

    key = jax.random.PRNGKey(0)
    x = jax.random.normal(key, (SEQ, BATCH, D_MODEL), jnp.float32)

    params = make_params(jax.random.PRNGKey(42), D_MODEL, D_FF, OUT)
    kparams = prepare_kernel_params(params, OUT_PAD)

    y = bug_localization_forward(x, kparams, out_size=OUT)
    y = jax.block_until_ready(y)

    y_ref = reference_forward(x, params)
    assert y.shape == (SEQ, BATCH, OUT), y.shape
    max_err = float(jnp.max(jnp.abs(y - y_ref)))
    # bf16 weights + approx reciprocal -> loosened tolerance vs. f32 reference
    assert max_err < 1e-2, max_err

    print("KERNEL_OK")
</pallas_src>

<mosaic_0001>
module attributes {stable_mosaic.version = 11 : i64} {
  func.func @encoder_fc_kernel(%arg0: i32, %arg1: memref<1x8x32xf32, #tpu.memory_space<vmem>>, %arg2: memref<32x32xbf16, #tpu.memory_space<vmem>>, %arg3: memref<32x32xbf16, #tpu.memory_space<vmem>>, %arg4: memref<32x32xbf16, #tpu.memory_space<vmem>>, %arg5: memref<1x32xf32, #tpu.memory_space<vmem>>, %arg6: memref<1x32xf32, #tpu.memory_space<vmem>>, %arg7: memref<1x32xf32, #tpu.memory_space<vmem>>, %arg8: memref<32x32xbf16, #tpu.memory_space<vmem>>, %arg9: memref<1x32xf32, #tpu.memory_space<vmem>>, %arg10: memref<1x32xf32, #tpu.memory_space<vmem>>, %arg11: memref<1x32xf32, #tpu.memory_space<vmem>>, %arg12: memref<32x2048xbf16, #tpu.memory_space<vmem>>, %arg13: memref<1x2048xf32, #tpu.memory_space<vmem>>, %arg14: memref<2048x32xbf16, #tpu.memory_space<vmem>>, %arg15: memref<1x32xf32, #tpu.memory_space<vmem>>, %arg16: memref<1x32xf32, #tpu.memory_space<vmem>>, %arg17: memref<1x32xf32, #tpu.memory_space<vmem>>, %arg18: memref<32x128xbf16, #tpu.memory_space<vmem>>, %arg19: memref<1x128xf32, #tpu.memory_space<vmem>>, %arg20: memref<1x8x128xf32, #tpu.memory_space<vmem>>) attributes {dimension_semantics = [#tpu.dimension_semantics<parallel>], iteration_bounds = array<i64: 2>, scalar_prefetch = 0 : i64, scratch_operands = 0 : i64, tpu.core_type = #tpu.core_type<tc>, window_params = [{transform_indices = @transform_0, window_bounds = array<i64: 1, 8, 32>}, {pipeline_mode = #tpu.pipeline_mode<synchronous>, transform_indices = @transform_1, window_bounds = array<i64: 32, 32>}, {pipeline_mode = #tpu.pipeline_mode<synchronous>, transform_indices = @transform_2, window_bounds = array<i64: 32, 32>}, {pipeline_mode = #tpu.pipeline_mode<synchronous>, transform_indices = @transform_3, window_bounds = array<i64: 32, 32>}, {pipeline_mode = #tpu.pipeline_mode<synchronous>, transform_indices = @transform_4, window_bounds = array<i64: 1, 32>}, {pipeline_mode = #tpu.pipeline_mode<synchronous>, transform_indices = @transform_5, window_bounds = array<i64: 1, 32>}, {pipeline_mode = #tpu.pipeline_mode<synchronous>, transform_indices = @transform_6, window_bounds = array<i64: 1, 32>}, {pipeline_mode = #tpu.pipeline_mode<synchronous>, transform_indices = @transform_7, window_bounds = array<i64: 32, 32>}, {pipeline_mode = #tpu.pipeline_mode<synchronous>, transform_indices = @transform_8, window_bounds = array<i64: 1, 32>}, {pipeline_mode = #tpu.pipeline_mode<synchronous>, transform_indices = @transform_9, window_bounds = array<i64: 1, 32>}, {pipeline_mode = #tpu.pipeline_mode<synchronous>, transform_indices = @transform_10, window_bounds = array<i64: 1, 32>}, {pipeline_mode = #tpu.pipeline_mode<synchronous>, transform_indices = @transform_11, window_bounds = array<i64: 32, 2048>}, {pipeline_mode = #tpu.pipeline_mode<synchronous>, transform_indices = @transform_12, window_bounds = array<i64: 1, 2048>}, {pipeline_mode = #tpu.pipeline_mode<synchronous>, transform_indices = @transform_13, window_bounds = array<i64: 2048, 32>}, {pipeline_mode = #tpu.pipeline_mode<synchronous>, transform_indices = @transform_14, window_bounds = array<i64: 1, 32>}, {pipeline_mode = #tpu.pipeline_mode<synchronous>, transform_indices = @transform_15, window_bounds = array<i64: 1, 32>}, {pipeline_mode = #tpu.pipeline_mode<synchronous>, transform_indices = @transform_16, window_bounds = array<i64: 1, 32>}, {pipeline_mode = #tpu.pipeline_mode<synchronous>, transform_indices = @transform_17, window_bounds = array<i64: 32, 128>}, {pipeline_mode = #tpu.pipeline_mode<synchronous>, transform_indices = @transform_18, window_bounds = array<i64: 1, 128>}, {transform_indices = @transform_19, window_bounds = array<i64: 1, 8, 128>}]} {
    %c0 = arith.constant 0 : index
    %c0_0 = arith.constant 0 : index
    %c0_1 = arith.constant 0 : index
    %0 = vector.load %arg1[%c0, %c0_0, %c0_1] : memref<1x8x32xf32, #tpu.memory_space<vmem>>, vector<1x8x32xf32>
    %1 = vector.shape_cast %0 : vector<1x8x32xf32> to vector<8x32xf32>
    %2 = arith.truncf %1 : vector<8x32xf32> to vector<8x32xbf16>
    %c0_2 = arith.constant 0 : index
    %c0_3 = arith.constant 0 : index
    %3 = vector.load %arg2[%c0_2, %c0_3] : memref<32x32xbf16, #tpu.memory_space<vmem>>, vector<32x32xbf16>
    %cst = arith.constant dense<0.000000e+00> : vector<8x32xf32>
    %4 = tpu.matmul %2, %3, %cst {dimension_numbers = #tpu.dot_dimension_numbers<[1], [0], [0], [1], [0, 0, 1, 1], [], []>} : vector<8x32xbf16>, vector<32x32xbf16>, vector<8x32xf32> -> vector<8x32xf32>
    %c0_4 = arith.constant 0 : index
    %c0_5 = arith.constant 0 : index
    %5 = vector.load %arg5[%c0_4, %c0_5] : memref<1x32xf32, #tpu.memory_space<vmem>>, vector<1x32xf32>
    %6 = vector.shape_cast %5 : vector<1x32xf32> to vector<32xf32>
    %7 = vector.shape_cast %6 : vector<32xf32> to vector<1x32xf32>
    %8 = vector.broadcast %7 : vector<1x32xf32> to vector<8x32xf32>
    %9 = arith.addf %4, %8 : vector<8x32xf32>
    %c0_6 = arith.constant 0 : index
    %c0_7 = arith.constant 0 : index
    %10 = vector.load %arg3[%c0_6, %c0_7] : memref<32x32xbf16, #tpu.memory_space<vmem>>, vector<32x32xbf16>
    %cst_8 = arith.constant dense<0.000000e+00> : vector<8x32xf32>
    %11 = tpu.matmul %2, %10, %cst_8 {dimension_numbers = #tpu.dot_dimension_numbers<[1], [0], [0], [1], [0, 0, 1, 1], [], []>} : vector<8x32xbf16>, vector<32x32xbf16>, vector<8x32xf32> -> vector<8x32xf32>
    %c0_9 = arith.constant 0 : index
    %c0_10 = arith.constant 0 : index
    %12 = vector.load %arg6[%c0_9, %c0_10] : memref<1x32xf32, #tpu.memory_space<vmem>>, vector<1x32xf32>
    %13 = vector.shape_cast %12 : vector<1x32xf32> to vector<32xf32>
    %14 = vector.shape_cast %13 : vector<32xf32> to vector<1x32xf32>
    %15 = vector.broadcast %14 : vector<1x32xf32> to vector<8x32xf32>
    %16 = arith.addf %11, %15 : vector<8x32xf32>
    %c0_11 = arith.constant 0 : index
    %c0_12 = arith.constant 0 : index
    %17 = vector.load %arg4[%c0_11, %c0_12] : memref<32x32xbf16, #tpu.memory_space<vmem>>, vector<32x32xbf16>
    %cst_13 = arith.constant dense<0.000000e+00> : vector<8x32xf32>
    %18 = tpu.matmul %2, %17, %cst_13 {dimension_numbers = #tpu.dot_dimension_numbers<[1], [0], [0], [1], [0, 0, 1, 1], [], []>} : vector<8x32xbf16>, vector<32x32xbf16>, vector<8x32xf32> -> vector<8x32xf32>
    %c0_14 = arith.constant 0 : index
    %c0_15 = arith.constant 0 : index
    %19 = vector.load %arg7[%c0_14, %c0_15] : memref<1x32xf32, #tpu.memory_space<vmem>>, vector<1x32xf32>
    %20 = vector.shape_cast %19 : vector<1x32xf32> to vector<32xf32>
    %21 = vector.shape_cast %20 : vector<32xf32> to vector<1x32xf32>
    %22 = vector.broadcast %21 : vector<1x32xf32> to vector<8x32xf32>
    %23 = arith.addf %18, %22 : vector<8x32xf32>
    %24 = vector.shape_cast %9 : vector<8x32xf32> to vector<1x8x32xf32>
    %25 = vector.shape_cast %16 : vector<8x32xf32> to vector<1x8x32xf32>
    %26 = vector.shape_cast %23 : vector<8x32xf32> to vector<1x8x32xf32>
    "tpu.trace_start"() <{level = 10 : i32, message = "bsd,btd->bst"}> : () -> ()
    %cst_16 = arith.constant dense<0.000000e+00> : vector<1x8x8xf32>
    %27 = tpu.matmul %24, %25, %cst_16 {dimension_numbers = #tpu.dot_dimension_numbers<[2], [2], [1], [1], [0, 0, 0, 1, 1, 1], [0], [0]>} : vector<1x8x32xf32>, vector<1x8x32xf32>, vector<1x8x8xf32> -> vector<1x8x8xf32>
    "tpu.trace_stop"() : () -> ()
    %cst_17 = arith.constant 0.176776692 : f32
    %28 = vector.broadcast %cst_17 : f32 to vector<1x8x8xf32>
    %29 = arith.mulf %27, %28 : vector<1x8x8xf32>
    %cst_18 = arith.constant dense<0xFF800000> : vector<1x8xf32>
    %30 = vector.multi_reduction <maximumf>, %29, %cst_18 [2] : vector<1x8x8xf32> to vector<1x8xf32>
    %31 = vector.shape_cast %30 : vector<1x8xf32> to vector<1x8x1xf32>
    %32 = vector.broadcast %31 : vector<1x8x1xf32> to vector<1x8x8xf32>
    %33 = arith.subf %29, %32 : vector<1x8x8xf32>
    %34 = math.exp %33 : vector<1x8x8xf32>
    %cst_19 = arith.constant dense<0.000000e+00> : vector<1x8xf32>
    %35 = vector.multi_reduction <add>, %34, %cst_19 [2] : vector<1x8x8xf32> to vector<1x8xf32>
    %36 = vector.shape_cast %35 : vector<1x8xf32> to vector<1x8x1xf32>
    %37 = tpu.reciprocal %36 {approx = true} : vector<1x8x1xf32> -> vector<1x8x1xf32>
    %38 = vector.broadcast %37 : vector<1x8x1xf32> to vector<1x8x8xf32>
    %39 = arith.mulf %34, %38 : vector<1x8x8xf32>
    "tpu.trace_start"() <{level = 10 : i32, message = "bst,btd->bsd"}> : () -> ()
    %cst_20 = arith.constant dense<0.000000e+00> : vector<1x8x32xf32>
    %40 = tpu.matmul %39, %26, %cst_20 {dimension_numbers = #tpu.dot_dimension_numbers<[2], [1], [1], [2], [0, 0, 0, 1, 1, 2], [0], [0]>} : vector<1x8x8xf32>, vector<1x8x32xf32>, vector<1x8x32xf32> -> vector<1x8x32xf32>
    "tpu.trace_stop"() : () -> ()
    %41 = vector.shape_cast %40 : vector<1x8x32xf32> to vector<8x32xf32>
    %42 = arith.truncf %41 : vector<8x32xf32> to vector<8x32xbf16>
    %c0_21 = arith.constant 0 : index
    %c0_22 = arith.constant 0 : index
    %43 = vector.load %arg8[%c0_21, %c0_22] : memref<32x32xbf16, #tpu.memory_space<vmem>>, vector<32x32xbf16>
    %cst_23 = arith.constant dense<0.000000e+00> : vector<8x32xf32>
    %44 = tpu.matmul %42, %43, %cst_23 {dimension_numbers = #tpu.dot_dimension_numbers<[1], [0], [0], [1], [0, 0, 1, 1], [], []>} : vector<8x32xbf16>, vector<32x32xbf16>, vector<8x32xf32> -> vector<8x32xf32>
    %c0_24 = arith.constant 0 : index
    %c0_25 = arith.constant 0 : index
    %45 = vector.load %arg9[%c0_24, %c0_25] : memref<1x32xf32, #tpu.memory_space<vmem>>, vector<1x32xf32>
    %46 = vector.shape_cast %45 : vector<1x32xf32> to vector<32xf32>
    %47 = vector.shape_cast %46 : vector<32xf32> to vector<1x32xf32>
    %48 = vector.broadcast %47 : vector<1x32xf32> to vector<8x32xf32>
    %49 = arith.addf %44, %48 : vector<8x32xf32>
    %50 = arith.addf %1, %49 : vector<8x32xf32>
    %c0_26 = arith.constant 0 : index
    %c0_27 = arith.constant 0 : index
    %51 = vector.load %arg10[%c0_26, %c0_27] : memref<1x32xf32, #tpu.memory_space<vmem>>, vector<1x32xf32>
    %52 = vector.shape_cast %51 : vector<1x32xf32> to vector<32xf32>
    %c0_28 = arith.constant 0 : index
    %c0_29 = arith.constant 0 : index
    %53 = vector.load %arg11[%c0_28, %c0_29] : memref<1x32xf32, #tpu.memory_space<vmem>>, vector<1x32xf32>
    %54 = vector.shape_cast %53 : vector<1x32xf32> to vector<32xf32>
    %cst_30 = arith.constant dense<0.000000e+00> : vector<8xf32>
    %55 = vector.multi_reduction <add>, %50, %cst_30 [1] : vector<8x32xf32> to vector<8xf32>
    %56 = vector.shape_cast %55 : vector<8xf32> to vector<8x1xf32>
    %cst_31 = arith.constant 3.200000e+01 : f32
    %57 = vector.broadcast %cst_31 : f32 to vector<8x1xf32>
    %58 = arith.divf %56, %57 : vector<8x1xf32>
    %59 = vector.broadcast %58 : vector<8x1xf32> to vector<8x32xf32>
    %60 = arith.subf %50, %59 : vector<8x32xf32>
    %61 = arith.mulf %60, %60 : vector<8x32xf32>
    %cst_32 = arith.constant dense<0.000000e+00> : vector<8xf32>
    %62 = vector.multi_reduction <add>, %61, %cst_32 [1] : vector<8x32xf32> to vector<8xf32>
    %63 = vector.shape_cast %62 : vector<8xf32> to vector<8x1xf32>
    %cst_33 = arith.constant 3.200000e+01 : f32
    %64 = vector.broadcast %cst_33 : f32 to vector<8x1xf32>
    %65 = arith.divf %63, %64 : vector<8x1xf32>
    %66 = vector.broadcast %58 : vector<8x1xf32> to vector<8x32xf32>
    %67 = arith.subf %50, %66 : vector<8x32xf32>
    %cst_34 = arith.constant 9.99999974E-6 : f32
    %68 = vector.broadcast %cst_34 : f32 to vector<8x1xf32>
    %69 = arith.addf %65, %68 : vector<8x1xf32>
    %70 = math.rsqrt %69 : vector<8x1xf32>
    %71 = vector.broadcast %70 : vector<8x1xf32> to vector<8x32xf32>
    %72 = arith.mulf %67, %71 : vector<8x32xf32>
    %73 = vector.shape_cast %52 : vector<32xf32> to vector<1x32xf32>
    %74 = vector.broadcast %73 : vector<1x32xf32> to vector<8x32xf32>
    %75 = arith.mulf %72, %74 : vector<8x32xf32>
    %76 = vector.shape_cast %54 : vector<32xf32> to vector<1x32xf32>
    %77 = vector.broadcast %76 : vector<1x32xf32> to vector<8x32xf32>
    %78 = arith.addf %75, %77 : vector<8x32xf32>
    %79 = arith.truncf %78 : vector<8x32xf32> to vector<8x32xbf16>
    %c0_35 = arith.constant 0 : index
    %c0_36 = arith.constant 0 : index
    %80 = vector.load %arg12[%c0_35, %c0_36] : memref<32x2048xbf16, #tpu.memory_space<vmem>>, vector<32x2048xbf16>
    %cst_37 = arith.constant dense<0.000000e+00> : vector<8x2048xf32>
    %81 = tpu.matmul %79, %80, %cst_37 {dimension_numbers = #tpu.dot_dimension_numbers<[1], [0], [0], [1], [0, 0, 1, 1], [], []>} : vector<8x32xbf16>, vector<32x2048xbf16>, vector<8x2048xf32> -> vector<8x2048xf32>
    %c0_38 = arith.constant 0 : index
    %c0_39 = arith.constant 0 : index
    %82 = vector.load %arg13[%c0_38, %c0_39] : memref<1x2048xf32, #tpu.memory_space<vmem>>, vector<1x2048xf32>
    %83 = vector.shape_cast %82 : vector<1x2048xf32> to vector<2048xf32>
    %84 = vector.shape_cast %83 : vector<2048xf32> to vector<1x2048xf32>
    %85 = vector.broadcast %84 : vector<1x2048xf32> to vector<8x2048xf32>
    %86 = arith.addf %81, %85 : vector<8x2048xf32>
    %cst_40 = arith.constant 0.000000e+00 : f32
    %87 = vector.broadcast %cst_40 : f32 to vector<8x2048xf32>
    %88 = arith.maximumf %86, %87 : vector<8x2048xf32>
    %89 = arith.truncf %88 : vector<8x2048xf32> to vector<8x2048xbf16>
    %c0_41 = arith.constant 0 : index
    %c0_42 = arith.constant 0 : index
    %90 = vector.load %arg14[%c0_41, %c0_42] : memref<2048x32xbf16, #tpu.memory_space<vmem>>, vector<2048x32xbf16>
    %cst_43 = arith.constant dense<0.000000e+00> : vector<8x32xf32>
    %91 = tpu.matmul %89, %90, %cst_43 {dimension_numbers = #tpu.dot_dimension_numbers<[1], [0], [0], [1], [0, 0, 1, 1], [], []>} : vector<8x2048xbf16>, vector<2048x32xbf16>, vector<8x32xf32> -> vector<8x32xf32>
    %c0_44 = arith.constant 0 : index
    %c0_45 = arith.constant 0 : index
    %92 = vector.load %arg15[%c0_44, %c0_45] : memref<1x32xf32, #tpu.memory_space<vmem>>, vector<1x32xf32>
    %93 = vector.shape_cast %92 : vector<1x32xf32> to vector<32xf32>
    %94 = vector.shape_cast %93 : vector<32xf32> to vector<1x32xf32>
    %95 = vector.broadcast %94 : vector<1x32xf32> to vector<8x32xf32>
    %96 = arith.addf %91, %95 : vector<8x32xf32>
    %97 = arith.addf %78, %96 : vector<8x32xf32>
    %c0_46 = arith.constant 0 : index
    %c0_47 = arith.constant 0 : index
    %98 = vector.load %arg16[%c0_46, %c0_47] : memref<1x32xf32, #tpu.memory_space<vmem>>, vector<1x32xf32>
    %99 = vector.shape_cast %98 : vector<1x32xf32> to vector<32xf32>
    %c0_48 = arith.constant 0 : index
    %c0_49 = arith.constant 0 : index
    %100 = vector.load %arg17[%c0_48, %c0_49] : memref<1x32xf32, #tpu.memory_space<vmem>>, vector<1x32xf32>
    %101 = vector.shape_cast %100 : vector<1x32xf32> to vector<32xf32>
    %cst_50 = arith.constant dense<0.000000e+00> : vector<8xf32>
    %102 = vector.multi_reduction <add>, %97, %cst_50 [1] : vector<8x32xf32> to vector<8xf32>
    %103 = vector.shape_cast %102 : vector<8xf32> to vector<8x1xf32>
    %cst_51 = arith.constant 3.200000e+01 : f32
    %104 = vector.broadcast %cst_51 : f32 to vector<8x1xf32>
    %105 = arith.divf %103, %104 : vector<8x1xf32>
    %106 = vector.broadcast %105 : vector<8x1xf32> to vector<8x32xf32>
    %107 = arith.subf %97, %106 : vector<8x32xf32>
    %108 = arith.mulf %107, %107 : vector<8x32xf32>
    %cst_52 = arith.constant dense<0.000000e+00> : vector<8xf32>
    %109 = vector.multi_reduction <add>, %108, %cst_52 [1] : vector<8x32xf32> to vector<8xf32>
    %110 = vector.shape_cast %109 : vector<8xf32> to vector<8x1xf32>
    %cst_53 = arith.constant 3.200000e+01 : f32
    %111 = vector.broadcast %cst_53 : f32 to vector<8x1xf32>
    %112 = arith.divf %110, %111 : vector<8x1xf32>
    %113 = vector.broadcast %105 : vector<8x1xf32> to vector<8x32xf32>
    %114 = arith.subf %97, %113 : vector<8x32xf32>
    %cst_54 = arith.constant 9.99999974E-6 : f32
    %115 = vector.broadcast %cst_54 : f32 to vector<8x1xf32>
    %116 = arith.addf %112, %115 : vector<8x1xf32>
    %117 = math.rsqrt %116 : vector<8x1xf32>
    %118 = vector.broadcast %117 : vector<8x1xf32> to vector<8x32xf32>
    %119 = arith.mulf %114, %118 : vector<8x32xf32>
    %120 = vector.shape_cast %99 : vector<32xf32> to vector<1x32xf32>
    %121 = vector.broadcast %120 : vector<1x32xf32> to vector<8x32xf32>
    %122 = arith.mulf %119, %121 : vector<8x32xf32>
    %123 = vector.shape_cast %101 : vector<32xf32> to vector<1x32xf32>
    %124 = vector.broadcast %123 : vector<1x32xf32> to vector<8x32xf32>
    %125 = arith.addf %122, %124 : vector<8x32xf32>
    %126 = arith.truncf %125 : vector<8x32xf32> to vector<8x32xbf16>
    %c0_55 = arith.constant 0 : index
    %c0_56 = arith.constant 0 : index
    %127 = vector.load %arg18[%c0_55, %c0_56] : memref<32x128xbf16, #tpu.memory_space<vmem>>, vector<32x128xbf16>
    %cst_57 = arith.constant dense<0.000000e+00> : vector<8x128xf32>
    %128 = tpu.matmul %126, %127, %cst_57 {dimension_numbers = #tpu.dot_dimension_numbers<[1], [0], [0], [1], [0, 0, 1, 1], [], []>} : vector<8x32xbf16>, vector<32x128xbf16>, vector<8x128xf32> -> vector<8x128xf32>
    %c0_58 = arith.constant 0 : index
    %c0_59 = arith.constant 0 : index
    %129 = vector.load %arg19[%c0_58, %c0_59] : memref<1x128xf32, #tpu.memory_space<vmem>>, vector<1x128xf32>
    %130 = vector.shape_cast %129 : vector<1x128xf32> to vector<128xf32>
    %131 = vector.shape_cast %130 : vector<128xf32> to vector<1x128xf32>
    %132 = vector.broadcast %131 : vector<1x128xf32> to vector<8x128xf32>
    %133 = arith.addf %128, %132 : vector<8x128xf32>
    %cst_60 = arith.constant 5.000000e-01 : f32
    %134 = vector.broadcast %cst_60 : f32 to vector<8x128xf32>
    %135 = arith.mulf %134, %133 : vector<8x128xf32>
    %136 = math.tanh %135 : vector<8x128xf32>
    %cst_61 = arith.constant 1.000000e+00 : f32
    %137 = vector.broadcast %cst_61 : f32 to vector<8x128xf32>
    %138 = arith.addf %136, %137 : vector<8x128xf32>
    %cst_62 = arith.constant 5.000000e-01 : f32
    %139 = vector.broadcast %cst_62 : f32 to vector<8x128xf32>
    %140 = arith.mulf %139, %138 : vector<8x128xf32>
    %141 = vector.shape_cast %140 : vector<8x128xf32> to vector<1x8x128xf32>
    %c0_63 = arith.constant 0 : index
    %c0_64 = arith.constant 0 : index
    %c0_65 = arith.constant 0 : index
    %142 = vector.load %arg20[%c0_63, %c0_64, %c0_65] : memref<1x8x128xf32, #tpu.memory_space<vmem>>, vector<1x8x128xf32>
    tpu.vector_store %arg20[%c0_63, %c0_64, %c0_65], %141 {strides = array<i32>} : memref<1x8x128xf32, #tpu.memory_space<vmem>>, vector<1x8x128xf32>,
    return
  }
  func.func @transform_0(%arg0: i32) -> (i32, i32, i32) {
    %c0_i32 = arith.constant 0 : i32
    %c0_i32_0 = arith.constant 0 : i32
    %c0_i32_1 = arith.constant 0 : i32
    return %arg0, %c0_i32, %c0_i32_0 : i32, i32, i32
  }
  func.func @transform_1(%arg0: i32) -> (i32, i32) {
    %c0_i32 = arith.constant 0 : i32
    %c0_i32_0 = arith.constant 0 : i32
    %c0_i32_1 = arith.constant 0 : i32
    return %c0_i32, %c0_i32_0 : i32, i32
  }
  func.func @transform_2(%arg0: i32) -> (i32, i32) {
    %c0_i32 = arith.constant 0 : i32
    %c0_i32_0 = arith.constant 0 : i32
    %c0_i32_1 = arith.constant 0 : i32
    return %c0_i32, %c0_i32_0 : i32, i32
  }
  func.func @transform_3(%arg0: i32) -> (i32, i32) {
    %c0_i32 = arith.constant 0 : i32
    %c0_i32_0 = arith.constant 0 : i32
    %c0_i32_1 = arith.constant 0 : i32
    return %c0_i32, %c0_i32_0 : i32, i32
  }
  func.func @transform_4(%arg0: i32) -> (i32, i32) {
    %c0_i32 = arith.constant 0 : i32
    %c0_i32_0 = arith.constant 0 : i32
    %c0_i32_1 = arith.constant 0 : i32
    return %c0_i32, %c0_i32_0 : i32, i32
  }
  func.func @transform_5(%arg0: i32) -> (i32, i32) {
    %c0_i32 = arith.constant 0 : i32
    %c0_i32_0 = arith.constant 0 : i32
    %c0_i32_1 = arith.constant 0 : i32
    return %c0_i32, %c0_i32_0 : i32, i32
  }
  func.func @transform_6(%arg0: i32) -> (i32, i32) {
    %c0_i32 = arith.constant 0 : i32
    %c0_i32_0 = arith.constant 0 : i32
    %c0_i32_1 = arith.constant 0 : i32
    return %c0_i32, %c0_i32_0 : i32, i32
  }
  func.func @transform_7(%arg0: i32) -> (i32, i32) {
    %c0_i32 = arith.constant 0 : i32
    %c0_i32_0 = arith.constant 0 : i32
    %c0_i32_1 = arith.constant 0 : i32
    return %c0_i32, %c0_i32_0 : i32, i32
  }
  func.func @transform_8(%arg0: i32) -> (i32, i32) {
    %c0_i32 = arith.constant 0 : i32
    %c0_i32_0 = arith.constant 0 : i32
    %c0_i32_1 = arith.constant 0 : i32
    return %c0_i32, %c0_i32_0 : i32, i32
  }
  func.func @transform_9(%arg0: i32) -> (i32, i32) {
    %c0_i32 = arith.constant 0 : i32
    %c0_i32_0 = arith.constant 0 : i32
    %c0_i32_1 = arith.constant 0 : i32
    return %c0_i32, %c0_i32_0 : i32, i32
  }
  func.func @transform_10(%arg0: i32) -> (i32, i32) {
    %c0_i32 = arith.constant 0 : i32
    %c0_i32_0 = arith.constant 0 : i32
    %c0_i32_1 = arith.constant 0 : i32
    return %c0_i32, %c0_i32_0 : i32, i32
  }
  func.func @transform_11(%arg0: i32) -> (i32, i32) {
    %c0_i32 = arith.constant 0 : i32
    %c0_i32_0 = arith.constant 0 : i32
    %c0_i32_1 = arith.constant 0 : i32
    return %c0_i32, %c0_i32_0 : i32, i32
  }
  func.func @transform_12(%arg0: i32) -> (i32, i32) {
    %c0_i32 = arith.constant 0 : i32
    %c0_i32_0 = arith.constant 0 : i32
    %c0_i32_1 = arith.constant 0 : i32
    return %c0_i32, %c0_i32_0 : i32, i32
  }
  func.func @transform_13(%arg0: i32) -> (i32, i32) {
    %c0_i32 = arith.constant 0 : i32
    %c0_i32_0 = arith.constant 0 : i32
    %c0_i32_1 = arith.constant 0 : i32
    return %c0_i32, %c0_i32_0 : i32, i32
  }
  func.func @transform_14(%arg0: i32) -> (i32, i32) {
    %c0_i32 = arith.constant 0 : i32
    %c0_i32_0 = arith.constant 0 : i32
    %c0_i32_1 = arith.constant 0 : i32
    return %c0_i32, %c0_i32_0 : i32, i32
  }
  func.func @transform_15(%arg0: i32) -> (i32, i32) {
    %c0_i32 = arith.constant 0 : i32
    %c0_i32_0 = arith.constant 0 : i32
    %c0_i32_1 = arith.constant 0 : i32
    return %c0_i32, %c0_i32_0 : i32, i32
  }
  func.func @transform_16(%arg0: i32) -> (i32, i32) {
    %c0_i32 = arith.constant 0 : i32
    %c0_i32_0 = arith.constant 0 : i32
    %c0_i32_1 = arith.constant 0 : i32
    return %c0_i32, %c0_i32_0 : i32, i32
  }
  func.func @transform_17(%arg0: i32) -> (i32, i32) {
    %c0_i32 = arith.constant 0 : i32
    %c0_i32_0 = arith.constant 0 : i32
    %c0_i32_1 = arith.constant 0 : i32
    return %c0_i32, %c0_i32_0 : i32, i32
  }
  func.func @transform_18(%arg0: i32) -> (i32, i32) {
    %c0_i32 = arith.constant 0 : i32
    %c0_i32_0 = arith.constant 0 : i32
    %c0_i32_1 = arith.constant 0 : i32
    return %c0_i32, %c0_i32_0 : i32, i32
  }
  func.func @transform_19(%arg0: i32) -> (i32, i32, i32) {
    %c0_i32 = arith.constant 0 : i32
    %c0_i32_0 = arith.constant 0 : i32
    %c0_i32_1 = arith.constant 0 : i32
    return %arg0, %c0_i32, %c0_i32_0 : i32, i32, i32
  }
}

</mosaic_0001>

<bundles_post_ra>
// kernel: bug_localization_forward.1
= control target key start
LH: loop header
LB: loop body
LE: loop exit
PB: predicated region body
PF: predicated region fallthrough
CT: control target
= control target key end

     0   :  { %s4643_s0 = inlined_call_operand.vmem [shape: f32[2,8,32], index: 0, kind: input, shape index: {}]   ;;  %s4644_s1 = inlined_call_operand.vmem [shape: bf16[32,32], index: 1, kind: input, shape index: {}]   ;;  %s4645_s2 = inlined_call_operand.vmem [shape: bf16[32,32], index: 2, kind: input, shape index: {}]   ;;  %s4646_s3 = inlined_call_operand.vmem [shape: bf16[32,32], index: 3, kind: input, shape index: {}]   ;;  %s4647_s4 = inlined_call_operand.vmem [shape: f32[1,32], index: 4, kind: input, shape index: {}]   ;;  %s4648_s5 = inlined_call_operand.vmem [shape: f32[1,32], index: 5, kind: input, shape index: {}]   ;;  %s4649_s6 = inlined_call_operand.vmem [shape: f32[1,32], index: 6, kind: input, shape index: {}]   ;;  %s4650_s7 = inlined_call_operand.vmem [shape: bf16[32,32], index: 7, kind: input, shape index: {}]   ;;  %s4651_s8 = inlined_call_operand.vmem [shape: f32[1,32], index: 8, kind: input, shape index: {}]   ;;  %s4652_s9 = inlined_call_operand.vmem [shape: f32[1,32], index: 9, kind: input, shape index: {}]   ;;  %s4653_s10 = inlined_call_operand.vmem [shape: f32[1,32], index: 10, kind: input, shape index: {}]   ;;  %s4654_s11 = inlined_call_operand.vmem [shape: bf16[32,2048], index: 11, kind: input, shape index: {}]   ;;  %s4655_s12 = inlined_call_operand.vmem [shape: f32[1,2048], index: 12, kind: input, shape index: {}]   ;;  %s4656_s13 = inlined_call_operand.vmem [shape: bf16[2048,32], index: 13, kind: input, shape index: {}]   ;;  %s4657_s14 = inlined_call_operand.vmem [shape: f32[1,32], index: 14, kind: input, shape index: {}]   ;;  %s4658_s15 = inlined_call_operand.vmem [shape: f32[1,32], index: 15, kind: input, shape index: {}]   ;;  %s4659_s16 = inlined_call_operand.vmem [shape: f32[1,32], index: 16, kind: input, shape index: {}]   ;;  %s4660_s17 = inlined_call_operand.vmem [shape: bf16[32,128], index: 17, kind: input, shape index: {}]   ;;  %s4661_s18 = inlined_call_operand.vmem [shape: f32[1,128], index: 18, kind: input, shape index: {}]   ;;  %s4662_s19 = inlined_call_operand.vmem [shape: f32[2,8,128], index: 19, kind: output, shape index: {}]  }
   0x1   :  { %4667 = sst [smem:[#allocation2_spill]] %s4643_s0  ;;  %s3920_s0 = smov 0  }
   0x2   :  { %4668 = sst [smem:[#allocation3_spill]] %s4644_s1 }
   0x3   :  { %4669 = sst [smem:[#allocation4_spill]] %s4645_s2 }
   0x4   :  { %4670 = sst [smem:[#allocation5_spill]] %s4646_s3 }
   0x5 LB: > { %s3200_s30 = sadd.s32 4294967295, %s3815_s0   ;;  %p3204_p0 = scmp.ge.s32.totalorder %s3815_s0, 1  ;;  %s3815_s0 = sphi %s3920_s0, %s29_s0  }
   0x6   : > { %p536_p1 = scmp.lt.s32.totalorder %s3815_s0, 3 }
   0x8   : > { %p537_p2 = pnand %p3204_p0, %p536_p1 }
   0x9   : > { %s4671_s1 = sld [smem:[#allocation4_spill]] (!%p537_p2)  ;;  %v3817_v1 = vmov (!%p537_p2), 0.0   ;;  %s4672_s23 = sld [smem:[#allocation3_spill]] (!%p537_p2)  ;;  %vm3818_vm0 = vmmov (!%p537_p2), 0   ;;  %vm624_vm1 = vcmask (!%p537_p2), 261120   ;;  %vm871_vm2 = vcmask (!%p537_p2), 64512  }
   0xa   : > { %540 = sbr.rel (%p537_p2) target bundleno = 2597 (0xa25), region = 96  ;;  %3608 = vmatprep.subr.bf16.mxu1 (!%p537_p2), %v3817_v1  ;;  %3600 = vmatprep.subr.bf16.mxu0 (!%p537_p2), %v3817_v1  ;;  %p590_p3 = scmp.lt.s32.totalorder (!%p537_p2), %s3200_s30, 1  ;;  %v3211_v7 = vld [vmem:[%s4648_s5] ss:$0 sm:$0xff] (!%p537_p2)  ;;  %v3668_v40 = vld [vmem:[%s4650_s7 + $0x8] sm:$0xff] (!%p537_p2)  }
   0xb   : > { %3612 = vmatprep.mubr.msk.bf16.mxu1 (!%p537_p2), %vm3818_vm0, %v3817_v1  ;;  %3604 = vmatprep.mubr.msk.bf16.mxu0 (!%p537_p2), %vm3818_vm0, %v3817_v1  ;;  %s4673_s20 = sld [smem:[#allocation2_spill]] (!%p537_p2)  ;;  %v3207_v8 = vld [vmem:[%s4647_s4] ss:$0 sm:$0xff] (!%p537_p2)  ;;  %s4674_s28 = sld [smem:[#allocation5_spill]] (!%p537_p2)  ;;  %v1056_v59 = vld [vmem:[%s4654_s11 + $0x8] sm:$0xff] (!%p537_p2) }
   0xc   : > { %v3215_v33 = vld [vmem:[%s4649_s6] ss:$0 sm:$0xff] (!%p537_p2)  ;;  %v1064_v61 = vld [vmem:[%s4654_s11 + $0x48] sm:$0xff] (!%p537_p2) }
   0xd   : > { %v3667_v36 = vld [vmem:[%s4650_s7] sm:$0xff] (!%p537_p2)   ;;  %v3230_v63 = vcombine.low (!%p537_p2), %v1056_v59, %v1064_v61 }
   0xe   : > { %v3222_v44 = vld [vmem:[%s4651_s8] ss:$0 sm:$0xff] (!%p537_p2) }
   0xf   : > { %v3661_v0 = vld [vmem:[%s4671_s1] sm:$0xff] (!%p537_p2)   ;;  %v3663_v3 = vld [vmem:[%s4671_s1 + $0x8] sm:$0xff] (!%p537_p2)  }
  0x10   : > { %v3662_v2 = vld [vmem:[%s4672_s23] sm:$0xff] (!%p537_p2)   ;;  %3609 = vmatpush3.bf16.msra.mxu1 (!%p537_p2), %v3661_v0  ;;  %v3664_v4 = vld [vmem:[%s4672_s23 + $0x8] sm:$0xff] (!%p537_p2)   ;;  %v3231_v0 = vcombine.high (!%p537_p2), %v1056_v59, %v1064_v61  ;;  %v1077_v59 = vld [vmem:[%s4654_s11 + $0xb0] sm:$0xff] (!%p537_p2) }
  0x11   : > { %3601 = vmatpush3.bf16.msra.mxu0 %v3662_v2  ;;  %3610 = vmatprep.subr.bf16.mxu1 %v3817_v1  ;;  %s4677_s30 = smov (!%p590_p3, %s3200_s30), 1  ;;  %v3665_v19 = vld [vmem:[%s4674_s28] sm:$0xff]   ;;  %v3666_v20 = vld [vmem:[%s4674_s28 + $0x8] sm:$0xff]   ;;  %v1078_v61 = vld [vmem:[%s4654_s11 + $0xb8] sm:$0xff] }
  0x12   : > { %3602 = vmatprep.subr.bf16.mxu0 %v3817_v1  ;;  %s4666_s27 = sshll.u32 %s4677_s30, 3  ;;  %v1055_v57 = vld [vmem:[%s4654_s11] sm:$0xff] }
  0x13   : > { %s593_s21 = scalar_lea.vmem %s4673_s20, %s4666_s27  ;;  %v1063_v58 = vld [vmem:[%s4654_s11 + $0x40] sm:$0xff]  ;;  %s4675_s27 = sshll.u32 %s4677_s30, 3 }
  0x14   : > { %3611 = vmatpush3.bf16.msra.mxu1 %v3663_v3  ;;  %v3957_v5 = vld [vmem:[%s593_s21] sm:$0xff]  ;;  %v3229_v60 = vcombine.high %v1055_v57, %v1063_v58  ;;  %v3228_v62 = vcombine.low %v1055_v57, %v1063_v58  ;;  %s597_s25 = scalar_lea.vmem %s4662_s19, %s4675_s27 }
  0x15   : > { %3603 = vmatpush3.bf16.msra.mxu0 %v3664_v4  ;;  %3624 = vmatprep.subr.mxu1 %v3817_v1  ;;  %v600_v6 = vpack.c.bf16 %v3957_v5, %v3957_v5  ;;  %v1071_v2 = vld [vmem:[%s4654_s11 + $0x80] sm:$0xff]  ;;  %v1072_v4 = vld [vmem:[%s4654_s11 + $0x88] sm:$0xff] }
  0x16   : > { %3616 = vmatprep.subr.bf16.mxu0 %v3817_v1  ;;  %v1079_v3 = vld [vmem:[%s4654_s11 + $0xc0] sm:$0xff] }
  0x17   : > { %3613 = vmatmul.mubr.msk.bf16.vlgmr.msra.gmra.mrb[0].mxu1 %vm624_vm1, %v600_v6 }
  0x18   : > { %3605 = vmatmul.mubr.msk.bf16.vlgmr.msra.gmra.mrb[0].mxu0 %vm624_vm1, %v600_v6  ;;  %3626 = vmatprep.mubr.msk.f32.mxu1 %vm3818_vm0, %v3817_v1 }
  0x19   : > { %3620 = vmatprep.mubr.msk.bf16.mxu0 %vm3818_vm0, %v3817_v1  ;;  %3617 = vmatpush3.bf16.msra.mxu0 %v3665_v19 }
  0x1a   : > { %3618 = vmatprep.subr.bf16.mxu0 %v3817_v1 }
  0x1d   : > { %3619 = vmatpush3.bf16.msra.mxu0 %v3666_v20 }
  0x1e   : > { %3634 = vmatprep.subr.bf16.mxu0 %v3817_v1 }
  0x20   : > { %3621 = vmatmul.mubr.msk.bf16.vlgmr.msra.gmra.mrb[4].mxu0 %vm624_vm1, %v600_v6  ;;  %v1080_v6 = vld [vmem:[%s4654_s11 + $0xc8] sm:$0xff] }
  0x21   : > { %3638 = vmatprep.mubr.msk.bf16.mxu0 %vm3818_vm0, %v3817_v1  ;;  %3635 = vmatpush3.bf16.msra.mxu0 %v3667_v36  ;;  %v1067_v36 = vld [vmem:[%s4654_s11 + $0x60] sm:$0xff] }
  0x22   : > { %3636 = vmatprep.subr.bf16.mxu0 %v3817_v1 }
  0x25   : > { %3637 = vmatpush3.bf16.msra.mxu0 %v3668_v40 }
  0x26   : > { %1375 = vmatprep.subr.bf16.mxu0 %v3231_v0 }
  0xea   : > { %v725_v9 = vpop.f32.mrb[0].mxu1 }
  0xeb   : > { %v662_v10 = vpop.f32.mrb[0].mxu0  ;;  %v726_v11 = vadd.f32 %v3211_v7, %v725_v9  ;;  %v3614_v12 = vpop.f32.mrb[1].mxu1  ;;  %v3244_v7 = vcombine.low %v1071_v2, %v1079_v3  ;;  %v3247_v9 = vcombine.high %v1072_v4, %v1080_v6 }
  0xec   : > { %v3606_v13 = vpop.f32.mrb[1].mxu0  ;;  %v728_v14 = vpop.f32.mrb[2].mxu1  ;;  %v663_v15 = vadd.f32 %v3207_v8, %v662_v10  ;;  %v3246_v8 = vcombine.low %v1072_v4, %v1080_v6  ;;  %v1057_v10 = vld [vmem:[%s4654_s11 + $0x10] sm:$0xff]  ;;  %v1058_v12 = vld [vmem:[%s4654_s11 + $0x18] sm:$0xff]  ;;  %v3669_v6 = vld [vmem:[%s4656_s13 + $0x40] sm:$0xff]  }
  0xed   : > { %v665_v16 = vpop.f32.mrb[2].mxu0  ;;  %v3615_v17 = vpop.f32.mrb[3].mxu1  ;;  %3625 = vmatpush3.xpose.msk.msra.mxu1 %vm624_vm1, %v726_v11  ;;  %v1065_v11 = vld [vmem:[%s4654_s11 + $0x50] sm:$0xff]  ;;  %v1066_v14 = vld [vmem:[%s4654_s11 + $0x58] sm:$0xff] }
  0xee   : > { %v3607_v18 = vpop.f32.mrb[3].mxu0  ;;  %3629 = vmatprep.subr.mxu1 %v3817_v1  ;;  %v3233_v13 = vcombine.high %v1057_v10, %v1065_v11  ;;  %v3232_v16 = vcombine.low %v1057_v10, %v1065_v11  ;;  %v3234_v17 = vcombine.low %v1058_v12, %v1066_v14  ;;  %v3673_v10 = vld [vmem:[%s4656_s13 + $0x48] sm:$0xff]  }
  0xef   : > { %v3235_v18 = vcombine.high %v1058_v12, %v1066_v14  ;;  %v3674_v11 = vld [vmem:[%s4656_s13 + $0xc8] sm:$0xff]   ;;  %v3677_v14 = vld [vmem:[%s4656_s13 + $0x50] sm:$0xff]  }
  0xf0   : > { %3627 = vmatmul.mubr.msk.f32.vlgmr.msra.gmra.mrb[4].mxu1 %vm624_vm1, %v663_v15  ;;  %v3819_v15 = vmov 0   ;;  %v3675_v12 = vld [vmem:[%s4656_s13 + $0x8] sm:$0xff]  }
  0xf1   : > { %3631 = vmatprep.mubr.msk.f32.mxu1 %vm3818_vm0, %v3817_v1 }
  0xf3   : > { %v788_v30 = vpop.f32.mrb[4].mxu0 }
  0xf4   : > { %v3622_v31 = vpop.f32.mrb[5].mxu0  ;;  %v789_v35 = vadd.f32 %v3215_v33, %v788_v30  ;;  %v1082_v30 = vld [vmem:[%s4654_s11 + $0xd8] sm:$0xff] }
  0xf5   : > { %v791_v32 = vpop.f32.mrb[6].mxu0 }
  0xf6   : > { %v3623_v34 = vpop.f32.mrb[7].mxu0  ;;  %3630 = vmatpush3.msra.mxu1 %v789_v35  ;;  %v1059_v35 = vld [vmem:[%s4654_s11 + $0x20] sm:$0xff] }
  0xf7   : > { %1334 = vmatprep.subr.bf16.mxu1 %v3229_v60  ;;  %v1085_v60 = vld [vmem:[%s4654_s11 + $0xf0] sm:$0xff] }
  0xf8   : > { %v3256_v4 = vcombine.low %v1077_v59, %v1085_v60 }
 0x1c3   : > { %v866_v21 = vpop.f32.mrb[4].mxu1 }
 0x1c4   : > { %v870_v22 = vmul.f32 0.17677669, %v866_v21  ;;  %v3628_v23 = vpop.f32.mrb[5].mxu1 }
 0x1c5   : > { %v3226_v23 = vld [vmem:[%s4652_s9] ss:$0 sm:$0xff] }
 0x1c6   : > { %v872_v24 = vsel %vm871_vm2, %v870_v22, -inf }
 0x1c7   : > { %873 = vmax.xlane.f32.xlu0 %v872_v24 }
 0x254   : > { %v874_v25 = vpop.xlane.xlu0 %873 }
 0x255   : > { %v875_v26 = vsub.f32 %v870_v22, %v874_v25  ;;  %v3227_v25 = vld [vmem:[%s4653_s10] ss:$0 sm:$0xff] }
 0x257   : > { %v876_v27 = vmul.f32 1.442695, %v875_v26 }
 0x259   : > { %3799 = vpow2.f32 %v876_v27  ;;  %v1073_v27 = vld [vmem:[%s4654_s11 + $0x90] sm:$0xff] }
 0x263   : > { %v3800_v28 = vpop.eup %3799 }
 0x264   : > { %v878_v29 = vsel %vm871_vm2, %v3800_v28, 0.0 }
 0x265   : > { %879 = vadd.xlane.f32.xlu0 %v878_v29  ;;  %v1074_v29 = vld [vmem:[%s4654_s11 + $0x98] sm:$0xff] }
 0x266   : > { %v3251_v34 = vcombine.high %v1074_v29, %v1082_v30  ;;  %v3250_v40 = vcombine.low %v1074_v29, %v1082_v30  ;;  %v3692_v29 = vld [vmem:[%s4656_s13 + $0xa8] sm:$0xff]   ;;  %v3693_v30 = vld [vmem:[%s4656_s13 + $0x70] sm:$0xff]  }
 0x2f2   : > { %v880_v37 = vpop.xlane.xlu0 %879 }
 0x2f3   : > { %3801 = vrcp.f32 %v880_v37  ;;  %v1060_v37 = vld [vmem:[%s4654_s11 + $0x28] sm:$0xff] }
 0x2fd   : > { %v3802_v38 = vpop.eup %3801 }
 0x2fe   : > { %v882_v39 = vmul.f32 %v3802_v38, %v3800_v28  ;;  %v1081_v28 = vld [vmem:[%s4654_s11 + $0xd0] sm:$0xff]  ;;  %v1068_v38 = vld [vmem:[%s4654_s11 + $0x68] sm:$0xff] }
 0x2ff   : > { %v3249_v33 = vcombine.high %v1073_v27, %v1081_v28 }
 0x300   : > { %3632 = vmatmul.mubr.msk.f32.vlgmr.msra.gmra.mrb[6].mxu1 %vm871_vm2, %v882_v39  ;;  %v3248_v39 = vcombine.low %v1073_v27, %v1081_v28  ;;  %v3690_v27 = vld [vmem:[%s4656_s13 + $0xe8] sm:$0xff]  }
 0x301   : > { %1335 = vmatpush1.bf16.msra.mxu1 %v3228_v62  ;;  %1366 = vmatprep.mubr.bf16.mxu1 %v3819_v15  ;;  %v1086_v62 = vld [vmem:[%s4654_s11 + $0xf8] sm:$0xff]  ;;  %v3691_v28 = vld [vmem:[%s4656_s13 + $0x28] sm:$0xff]  }
 0x3d3   : > { %v952_v41 = vpop.f32.mrb[6].mxu1 }
 0x3d4   : > { %v956_v42 = vpack.c.bf16 %v952_v41, %v952_v41  ;;  %v3633_v43 = vpop.f32.mrb[7].mxu1  ;;  %v3237_v41 = vcombine.high %v1059_v35, %v1067_v36 }
 0x3d5   : > { %v1075_v43 = vld [vmem:[%s4654_s11 + $0xa0] sm:$0xff] }
 0x3d6   : > { %3639 = vmatmul.mubr.msk.bf16.vlgmr.msra.gmra.mrb[8].mxu0 %vm624_vm1, %v956_v42  ;;  %v3239_v42 = vcombine.high %v1060_v37, %v1068_v38 }
 0x3d7   : > { %1376 = vmatpush1.bf16.msra.mxu0 %v3230_v63  ;;  %1407 = vmatprep.mubr.bf16.mxu0 %v3819_v15 }
 0x3d8   : > { %1377 = vmatprep.subr.bf16.mxu0 %v3247_v9  ;;  %v3672_v9 = vld [vmem:[%s4656_s13 + $0x80] sm:$0xff]  }
 0x3db   : > { %1378 = vmatpush1.bf16.msra.mxu0 %v3246_v8  ;;  %v3671_v8 = vld [vmem:[%s4656_s13] sm:$0xff]  }
 0x3dc   : > { %1457 = vmatprep.subr.bf16.mxu0 %v3235_v18  ;;  %v3681_v18 = vld [vmem:[%s4656_s13 + $0x58] sm:$0xff]  }
 0x4a9   : > { %v1017_v45 = vpop.f32.mrb[8].mxu0 }
 0x4aa   : > { %v1018_v46 = vadd.f32 %v3222_v44, %v1017_v45  ;;  %v3640_v47 = vpop.f32.mrb[9].mxu0  ;;  %v1083_v44 = vld [vmem:[%s4654_s11 + $0xe0] sm:$0xff]  ;;  %v1076_v45 = vld [vmem:[%s4654_s11 + $0xa8] sm:$0xff] }
 0x4ab   : > { %v1020_v48 = vpop.f32.mrb[10].mxu0  ;;  %v3236_v47 = vcombine.low %v1059_v35, %v1067_v36  ;;  %v3697_v35 = vld [vmem:[%s4656_s13 + $0x78] sm:$0xff]  }
 0x4ac   : > { %v3641_v49 = vpop.f32.mrb[11].mxu0  ;;  %v1023_v50 = vadd.f32 %v1018_v46, %v3957_v5  ;;  %v3245_v5 = vcombine.high %v1071_v2, %v1079_v3  ;;  %v1084_v46 = vld [vmem:[%s4654_s11 + $0xe8] sm:$0xff]  ;;  %v3238_v48 = vcombine.low %v1060_v37, %v1068_v38  ;;  %v3257_v2 = vcombine.high %v1077_v59, %v1085_v60  ;;  %v3698_v36 = vld [vmem:[%s4656_s13 + $0xf8] sm:$0xff]  }
 0x4ad   : > { %v3253_v49 = vcombine.high %v1075_v43, %v1083_v44  ;;  %v3259_v3 = vcombine.high %v1078_v61, %v1086_v62  ;;  %v3699_v37 = vld [vmem:[%s4656_s13 + $0x38] sm:$0xff]  }
 0x4ae   : > { %v1026_v51 = vsel %vm624_vm1, %v1023_v50, 0.0  ;;  %1336 = vmatprep.subr.bf16.mxu1 %v3245_v5  ;;  %v3258_v5 = vcombine.low %v1078_v61, %v1086_v62  ;;  %v3700_v38 = vld [vmem:[%s4656_s13 + $0xb8] sm:$0xff]  }
 0x4af   : > { %1027 = vadd.xlane.f32.xlu1 %v1026_v51  ;;  %1337 = vmatpush1.bf16.msra.mxu1 %v3244_v7  ;;  %v1061_v51 = vld [vmem:[%s4654_s11 + $0x30] sm:$0xff]  ;;  %v3670_v7 = vld [vmem:[%s4656_s13 + $0xc0] sm:$0xff]  }
 0x4b0   : > { %1416 = vmatprep.subr.bf16.mxu1 %v3233_v13  ;;  %v3676_v13 = vld [vmem:[%s4656_s13 + $0x88] sm:$0xff]  }
 0x53c   : > { %v1028_v52 = vpop.xlane.xlu1 %1027 }
 0x53d   : > { %v1030_v53 = vmul.f32 0.03125, %v1028_v52  ;;  %v1069_v52 = vld [vmem:[%s4654_s11 + $0x70] sm:$0xff] }
 0x53e   : > { %v3241_v57 = vcombine.high %v1061_v51, %v1069_v52  ;;  %v3240_v63 = vcombine.low %v1061_v51, %v1069_v52 }
 0x53f   : > { %v1031_v54 = vsub.f32 %v1023_v50, %v1030_v53  ;;  %v3255_v50 = vcombine.high %v1076_v45, %v1084_v46  ;;  %v1062_v53 = vld [vmem:[%s4654_s11 + $0x38] sm:$0xff] }
 0x541   : > { %v1032_v55 = vmul.f32 %v1031_v54, %v1031_v54 }
 0x543   : > { %v1033_v56 = vsel %vm624_vm1, %v1032_v55, 0.0  ;;  %v3252_v55 = vcombine.low %v1075_v43, %v1083_v44  ;;  %v4250_v44 = vld [vmem:[%s4655_s12 + $0x8] sm:$0xff] }
 0x544   : > { %1034 = vadd.xlane.f32.xlu1 %v1033_v56  ;;  %v3254_v56 = vcombine.low %v1076_v45, %v1084_v46 }
 0x5d1   : > { %v1035_v19 = vpop.xlane.xlu1 %1034 }
 0x5d2   : > { %v1036_v20 = vmul.f32 0.03125, %v1035_v19  ;;  %v3682_v19 = vld [vmem:[%s4656_s13 + $0xd8] sm:$0xff]  }
 0x5d4   : > { %v1037_v21 = vadd.f32 1e-05, %v1036_v20  ;;  %v3683_v20 = vld [vmem:[%s4656_s13 + $0x18] sm:$0xff]  }
 0x5d6   : > { %3803 = vrsqrt.f32 %v1037_v21  ;;  %v3684_v21 = vld [vmem:[%s4656_s13 + $0x98] sm:$0xff]  }
 0x5e0   : > { %v3804_v22 = vpop.eup %3803 }
 0x5e1   : > { %v1039_v24 = vmul.f32 %v3804_v22, %v1031_v54  ;;  %v1070_v54 = vld [vmem:[%s4654_s11 + $0x78] sm:$0xff]  ;;  %v3685_v22 = vld [vmem:[%s4656_s13 + $0x60] sm:$0xff]  }
 0x5e2   : > { %v3243_v58 = vcombine.high %v1062_v53, %v1070_v54  ;;  %v3242_v0 = vcombine.low %v1062_v53, %v1070_v54 }
 0x5e3   : > { %v1046_v26 = vmul.f32 %v3226_v23, %v1039_v24  ;;  %v3686_v23 = vld [vmem:[%s4656_s13 + $0xe0] sm:$0xff]  }
 0x5e4   : > { %v3687_v24 = vld [vmem:[%s4656_s13 + $0x20] sm:$0xff]  }
 0x5e5   : > { %v4066_v31 = vadd.f32 %v3227_v25, %v1046_v26  ;;  %v3688_v25 = vld [vmem:[%s4656_s13 + $0xa0] sm:$0xff]   ;;  %v3689_v26 = vld [vmem:[%s4656_s13 + $0x68] sm:$0xff]  }
 0x5e7   : > { %v4070_v32 = vpack.c.bf16 %v4066_v31, %v4066_v31 }
 0x5e9   : > { %3260 = vmatmul.mubr.msk.bf16.vlgmr.msra.gmra.mrb[8].mxu1 %vm624_vm1, %v4070_v32  ;;  %3261 = vmatmul.mubr.msk.bf16.vlgmr.msra.gmra.mrb[12].mxu0 %vm624_vm1, %v4070_v32 }
 0x5ea   : > { %1417 = vmatpush1.bf16.msra.mxu1 %v3232_v16  ;;  %1458 = vmatpush1.bf16.msra.mxu0 %v3234_v17  ;;  %v3679_v16 = vld [vmem:[%s4656_s13 + $0x10] sm:$0xff]  }
 0x5eb   : > { %1418 = vmatprep.subr.bf16.mxu1 %v3249_v33  ;;  %1459 = vmatprep.subr.bf16.mxu0 %v3251_v34  ;;  %v3680_v17 = vld [vmem:[%s4656_s13 + $0x90] sm:$0xff]  }
 0x5ec   : > { %1448 = vmatprep.mubr.bf16.mxu1 %v3819_v15  ;;  %1489 = vmatprep.mubr.bf16.mxu0 %v3819_v15  ;;  %v3695_v33 = vld [vmem:[%s4656_s13 + $0x30] sm:$0xff]  }
 0x5ed   : > { %v3696_v34 = vld [vmem:[%s4656_s13 + $0xb0] sm:$0xff]  }
 0x5ee   : > { %1419 = vmatpush1.bf16.msra.mxu1 %v3248_v39  ;;  %1460 = vmatpush1.bf16.msra.mxu0 %v3250_v40  ;;  %v3701_v39 = vld [vmem:[%s4656_s13 + $0x140] sm:$0xff]  }
 0x5ef   : > { %1498 = vmatprep.subr.bf16.mxu1 %v3237_v41  ;;  %1539 = vmatprep.subr.bf16.mxu0 %v3239_v42  ;;  %v3702_v40 = vld [vmem:[%s4656_s13 + $0x1c0] sm:$0xff]   ;;  %v1091_v41 = vlaneseq }
 0x5f1   : > { %3262 = vmatmul.mubr.msk.bf16.vlgmr.msra.gmra.mrb[12].mxu1 %vm624_vm1, %v4070_v32  ;;  %3263 = vmatmul.mubr.msk.bf16.vlgmr.msra.gmra.mrb[16].mxu0 %vm624_vm1, %v4070_v32  ;;  %v4244_v42 = vshrl.u32 %v1091_v41, 7  ;;  %v3711_v41 = vld [vmem:[%s4656_s13 + $0x110] sm:$0xff]  }
 0x5f2   : > { %1499 = vmatpush1.bf16.msra.mxu1 %v3236_v47  ;;  %1540 = vmatpush1.bf16.msra.mxu0 %v3238_v48  ;;  %v4262_v48 = vld [vmem:[%s4655_s12] sm:$0xff] }
 0x5f3   : > { %1500 = vmatprep.subr.bf16.mxu1 %v3253_v49  ;;  %1541 = vmatprep.subr.bf16.mxu0 %v3255_v50  ;;  %v1117_v43 = vsub.s32 6, %v4244_v42  ;;  %v1093_v46 = vsub.s32 0, %v4244_v42  ;;  %v1101_v47 = vsub.s32 2, %v4244_v42  ;;  %v1097_v49 = vsub.s32 1, %v4244_v42 }
 0x5f4   : > { %1530 = vmatprep.mubr.bf16.mxu1 %v3819_v15  ;;  %1571 = vmatprep.mubr.bf16.mxu0 %v3819_v15  ;;  %v1105_v50 = vsub.s32 3, %v4244_v42 }
 0x5f5   : > { %v4255_v45 = vrot.slane %v4250_v44, %v1117_v43  ;;  %v1094_v51 = vrot.slane %v4262_v48, %v1093_v46  ;;  %v1102_v52 = vrot.slane %v4262_v48, %v1101_v47  ;;  %v1098_v53 = vrot.slane %v4262_v48, %v1097_v49 }
 0x5f6   : > { %1501 = vmatpush1.bf16.msra.mxu1 %v3252_v55  ;;  %1542 = vmatpush1.bf16.msra.mxu0 %v3254_v56  ;;  %v1106_v54 = vrot.slane %v4262_v48, %v1105_v50 }
 0x5f7   : > { %1580 = vmatprep.subr.bf16.mxu1 %v3241_v57  ;;  %1621 = vmatprep.subr.bf16.mxu0 %v3243_v58 }
 0x5f9   : > { %3264 = vmatmul.mubr.msk.bf16.vlgmr.msra.gmra.mrb[16].mxu1 %vm624_vm1, %v4070_v32  ;;  %3265 = vmatmul.mubr.msk.bf16.vlgmr.msra.gmra.mrb[20].mxu0 %vm624_vm1, %v4070_v32 }
 0x5fa   : > { %1581 = vmatpush1.bf16.msra.mxu1 %v3240_v63  ;;  %1622 = vmatpush1.bf16.msra.mxu0 %v3242_v0 }
 0x5fb   : > { %1582 = vmatprep.subr.bf16.mxu1 %v3257_v2  ;;  %1623 = vmatprep.subr.bf16.mxu0 %v3259_v3  ;;  %v1113_v2 = vsub.s32 5, %v4244_v42  ;;  %v1121_v3 = vsub.s32 7, %v4244_v42 }
 0x5fc   : > { %1612 = vmatprep.mubr.bf16.mxu1 %v3819_v15  ;;  %1653 = vmatprep.mubr.bf16.mxu0 %v3819_v15  ;;  %v3678_v15 = vld [vmem:[%s4656_s13 + $0xd0] sm:$0xff]  }
 0x5fe   : > { %1583 = vmatpush1.bf16.msra.mxu1 %v3256_v4  ;;  %1624 = vmatpush1.bf16.msra.mxu0 %v3258_v5 }
 0x5ff   : > { %3421 = vmatprep.subr.bf16.mxu1 %v3669_v6  ;;  %3443 = vmatprep.subr.bf16.mxu0 %v3670_v7 }
 0x601   : > { %3266 = vmatmul.mubr.msk.bf16.vlgmr.msra.gmra.mrb[20].mxu1 %vm624_vm1, %v4070_v32  ;;  %3267 = vmatmul.mubr.msk.bf16.vlgmr.msra.gmra.mrb[24].mxu0 %vm624_vm1, %v4070_v32  ;;  %v3694_v32 = vld [vmem:[%s4656_s13 + $0xf0] sm:$0xff]  }
 0x602   : > { %3422 = vmatpush3.bf16.msra.mxu1 %v3671_v8  ;;  %3444 = vmatpush3.bf16.msra.mxu0 %v3672_v9 }
 0x603   : > { %3423 = vmatprep.subr.bf16.mxu1 %v3673_v10  ;;  %3445 = vmatprep.subr.bf16.mxu0 %v3674_v11 }
 0x606   : > { %3424 = vmatpush3.bf16.msra.mxu1 %v3675_v12  ;;  %3446 = vmatpush3.bf16.msra.mxu0 %v3676_v13  ;;  %v1114_v12 = vrot.slane %v4262_v48, %v1113_v2  ;;  %v1122_v13 = vrot.slane %v4262_v48, %v1121_v3 }
 0x607   : > { %3425 = vmatprep.subr.bf16.mxu1 %v3677_v14  ;;  %3447 = vmatprep.subr.bf16.mxu0 %v3678_v15  ;;  %v3703_v14 = vld [vmem:[%s4656_s13 + $0x100] sm:$0xff]  }
 0x608   : > { %v3704_v15 = vld [vmem:[%s4656_s13 + $0x180] sm:$0xff]  }
 0x60a   : > { %3426 = vmatpush3.bf16.msra.mxu1 %v3679_v16  ;;  %3448 = vmatpush3.bf16.msra.mxu0 %v3680_v17 }
 0x60b   : > { %3427 = vmatprep.subr.bf16.mxu1 %v3681_v18  ;;  %3449 = vmatprep.subr.bf16.mxu0 %v3682_v19  ;;  %v3705_v18 = vld [vmem:[%s4656_s13 + $0x148] sm:$0xff]  }
 0x60c   : > { %v3706_v19 = vld [vmem:[%s4656_s13 + $0x1c8] sm:$0xff]  }
 0x60e   : > { %3428 = vmatpush3.bf16.msra.mxu1 %v3683_v20  ;;  %3450 = vmatpush3.bf16.msra.mxu0 %v3684_v21 }
 0x60f   : > { %3429 = vmatprep.subr.bf16.mxu1 %v3685_v22  ;;  %3451 = vmatprep.subr.bf16.mxu0 %v3686_v23 }
 0x612   : > { %3430 = vmatpush3.bf16.msra.mxu1 %v3687_v24  ;;  %3452 = vmatpush3.bf16.msra.mxu0 %v3688_v25 }
 0x613   : > { %3431 = vmatprep.subr.bf16.mxu1 %v3689_v26  ;;  %3453 = vmatprep.subr.bf16.mxu0 %v3690_v27 }
 0x616   : > { %3432 = vmatpush3.bf16.msra.mxu1 %v3691_v28  ;;  %3454 = vmatpush3.bf16.msra.mxu0 %v3692_v29  ;;  %v3707_v28 = vld [vmem:[%s4656_s13 + $0x108] sm:$0xff]  }
 0x617   : > { %3433 = vmatprep.subr.bf16.mxu1 %v3693_v30  ;;  %3455 = vmatprep.subr.bf16.mxu0 %v3694_v32  ;;  %v3708_v29 = vld [vmem:[%s4656_s13 + $0x188] sm:$0xff]  }
 0x61a   : > { %3434 = vmatpush3.bf16.msra.mxu1 %v3695_v33  ;;  %3456 = vmatpush3.bf16.msra.mxu0 %v3696_v34  ;;  %v3709_v33 = vld [vmem:[%s4656_s13 + $0x150] sm:$0xff]  }
 0x61b   : > { %3435 = vmatprep.subr.bf16.mxu1 %v3697_v35  ;;  %3457 = vmatprep.subr.bf16.mxu0 %v3698_v36  ;;  %v3710_v34 = vld [vmem:[%s4656_s13 + $0x1d0] sm:$0xff]  }
 0x61e   : > { %3436 = vmatpush3.bf16.msra.mxu1 %v3699_v37  ;;  %3458 = vmatpush3.bf16.msra.mxu0 %v3700_v38  ;;  %v1126_v37 = vrot.slane %v4250_v44, %v1093_v46  ;;  %v1134_v38 = vrot.slane %v4250_v44, %v1101_v47  ;;  %v3713_v46 = vld [vmem:[%s4656_s13 + $0x158] sm:$0xff]  }
 0x61f   : > { %3465 = vmatprep.subr.bf16.mxu1 %v3701_v39  ;;  %3487 = vmatprep.subr.bf16.mxu0 %v3702_v40  ;;  %v3714_v47 = vld [vmem:[%s4656_s13 + $0x1d8] sm:$0xff]  }
 0x6bc   : > { %v1368_v55 = vpop.f32.mrb[8].mxu1  ;;  %v1409_v56 = vpop.f32.mrb[12].mxu0 }
 0x6bd   : > { %v1369_v57 = vadd.f32 %v1368_v55, %v1094_v51  ;;  %v1410_v58 = vadd.f32 %v1409_v56, %v1102_v52  ;;  %v1370_v59 = vpop.f32.mrb[9].mxu1  ;;  %v1411_v60 = vpop.f32.mrb[13].mxu0  ;;  %v3712_v51 = vld [vmem:[%s4656_s13 + $0x190] sm:$0xff]  }
 0x6be   : > { %v1371_v61 = vadd.f32 %v1370_v59, %v1098_v53  ;;  %v1412_v62 = vadd.f32 %v1411_v60, %v1106_v54  ;;  %v1372_v63 = vpop.f32.mrb[10].mxu1  ;;  %v1413_v0 = vpop.f32.mrb[14].mxu0  ;;  %v3715_v60 = vld [vmem:[%s4656_s13 + $0x118] sm:$0xff]  }
 0x6bf   : > { %v1662_v4 = vmax.f32 %v1369_v57, 0.0  ;;  %v1664_v5 = vmax.f32 %v1410_v58, 0.0  ;;  %v1373_v6 = vpop.f32.mrb[11].mxu1  ;;  %v1414_v7 = vpop.f32.mrb[15].mxu0 }
 0x6c0   : > { %v1663_v8 = vmax.f32 %v1371_v61, 0.0  ;;  %v1665_v9 = vmax.f32 %v1412_v62, 0.0  ;;  %v3716_v61 = vld [vmem:[%s4656_s13 + $0x198] sm:$0xff]   ;;  %v1109_v62 = vsub.s32 4, %v4244_v42  ;;  %v3719_v7 = vld [vmem:[%s4656_s13 + $0x120] sm:$0xff]  }
 0x6c1   : > { %v1678_v16 = vpack.c.bf16 %v1662_v4, %v1662_v4  ;;  %v1680_v17 = vpack.c.bf16 %v1664_v5, %v1664_v5  ;;  %v3717_v4 = vld [vmem:[%s4656_s13 + $0x160] sm:$0xff]   ;;  %v3762_v42 = vld [vmem:[%s4656_s13 + $0x2f8] sm:$0xff]  }
 0x6c2   : > { %v1679_v10 = vpack.c.bf16 %v1663_v8, %v1663_v8  ;;  %v1681_v11 = vpack.c.bf16 %v1665_v9, %v1665_v9  ;;  %v3718_v5 = vld [vmem:[%s4656_s13 + $0x1e0] sm:$0xff]   ;;  %v1142_v6 = vrot.slane %v4250_v44, %v1109_v62  ;;  %v3721_v9 = vld [vmem:[%s4656_s13 + $0x168] sm:$0xff]  }
 0x6c3   : > { %v3720_v8 = vld [vmem:[%s4656_s13 + $0x1a0] sm:$0xff]  }
 0x6c4   : > { %v4294_v20 = vpop.f32.mrb[12].mxu1  ;;  %v4296_v21 = vpop.f32.mrb[16].mxu0  ;;  %2757 = vmatprep.mubr.bf16.mxu1 %v1679_v10  ;;  %2797 = vmatprep.mubr.bf16.mxu0 %v1681_v11  ;;  %v3722_v10 = vld [vmem:[%s4656_s13 + $0x1e8] sm:$0xff]  }
 0x6c5   : > { %v1452_v22 = vpop.f32.mrb[13].mxu1  ;;  %v1493_v23 = vpop.f32.mrb[17].mxu0  ;;  %2758 = vmatmul.mubr.bf16.vlgmr.msra.gmra.mrb[24].mxu1 %v1678_v16  ;;  %2798 = vmatmul.mubr.bf16.vlgmr.msra.gmra.mrb[28].mxu0 %v1680_v17 }
 0x6c6   : > { %v1453_v24 = vadd.f32 %v1452_v22, %v1114_v12  ;;  %v1494_v25 = vadd.f32 %v1493_v23, %v1122_v13  ;;  %3466 = vmatpush3.bf16.msra.mxu1 %v3703_v14  ;;  %3488 = vmatpush3.bf16.msra.mxu0 %v3704_v15  ;;  %v1454_v26 = vpop.f32.mrb[14].mxu1  ;;  %v1495_v27 = vpop.f32.mrb[18].mxu0  ;;  %v3724_v22 = vld [vmem:[%s4656_s13 + $0x1a8] sm:$0xff]   ;;  %v1110_v23 = vrot.slane %v4262_v48, %v1109_v62  ;;  %v3743_v62 = vld [vmem:[%s4656_s13 + $0x210] sm:$0xff]  }
 0x6c7   : > { %v1455_v30 = vpop.f32.mrb[15].mxu1  ;;  %v1496_v32 = vpop.f32.mrb[19].mxu0  ;;  %3467 = vmatprep.subr.bf16.mxu1 %v3705_v18  ;;  %3489 = vmatprep.subr.bf16.mxu0 %v3706_v19  ;;  %v3723_v19 = vld [vmem:[%s4656_s13 + $0x128] sm:$0xff]   ;;  %v3725_v26 = vld [vmem:[%s4656_s13 + $0x170] sm:$0xff]  }
 0x6c8   : > { %v1667_v35 = vmax.f32 %v1453_v24, 0.0  ;;  %v1669_v36 = vmax.f32 %v1494_v25, 0.0  ;;  %v3726_v27 = vld [vmem:[%s4656_s13 + $0x1f0] sm:$0xff]   ;;  %v1451_v30 = vadd.f32 %v4294_v20, %v1110_v23  ;;  %v3731_v20 = vld [vmem:[%s4656_s13 + $0x138] sm:$0xff]   ;;  %v1146_v23 = vrot.slane %v4250_v44, %v1113_v2 }
 0x6ca   : > { %v1683_v39 = vpack.c.bf16 %v1667_v35, %v1667_v35  ;;  %v1685_v40 = vpack.c.bf16 %v1669_v36, %v1669_v36  ;;  %3468 = vmatpush3.bf16.msra.mxu1 %v3707_v28  ;;  %3490 = vmatpush3.bf16.msra.mxu0 %v3708_v29  ;;  %v1130_v28 = vrot.slane %v4250_v44, %v1097_v49  ;;  %v3728_v29 = vld [vmem:[%s4656_s13 + $0x1b0] sm:$0xff]   ;;  %v3729_v49 = vld [vmem:[%s4656_s13 + $0x178] sm:$0xff]   ;;  %v1666_v35 = vmax.f32 %v1451_v30, 0.0 }
 0x6cb   : > { %3469 = vmatprep.subr.bf16.mxu1 %v3709_v33  ;;  %3491 = vmatprep.subr.bf16.mxu0 %v3710_v34 }
 0x6cc   : > { %v1532_v52 = vpop.f32.mrb[16].mxu1  ;;  %v1573_v53 = vpop.f32.mrb[20].mxu0  ;;  %2837 = vmatprep.mubr.bf16.mxu1 %v1683_v39  ;;  %2877 = vmatprep.mubr.bf16.mxu0 %v1685_v40 }
 0x6cd   : > { %v4324_v54 = vadd.f32 %v1532_v52, %v1126_v37  ;;  %v4326_v55 = vadd.f32 %v1573_v53, %v1134_v38  ;;  %v1534_v56 = vpop.f32.mrb[17].mxu1  ;;  %v1575_v57 = vpop.f32.mrb[21].mxu0  ;;  %v3733_v37 = vld [vmem:[%s4656_s13 + $0x240] sm:$0xff]   ;;  %v3737_v53 = vld [vmem:[%s4656_s13 + $0x248] sm:$0xff]  }
 0x6ce   : > { %3470 = vmatpush3.bf16.msra.mxu1 %v3711_v41  ;;  %3492 = vmatpush3.bf16.msra.mxu0 %v3712_v51  ;;  %v1536_v58 = vpop.f32.mrb[18].mxu1  ;;  %v1577_v59 = vpop.f32.mrb[22].mxu0  ;;  %v1535_v33 = vadd.f32 %v1534_v56, %v1130_v28  ;;  %v3734_v38 = vld [vmem:[%s4656_s13 + $0x2c0] sm:$0xff]   ;;  %v1682_v51 = vpack.c.bf16 %v1666_v35, %v1666_v35  ;;  %v3738_v56 = vld [vmem:[%s4656_s13 + $0x2c8] sm:$0xff]   ;;  %v3764_v28 = vld [vmem:[%s4656_s13 + $0x2b8] sm:$0xff]  }
 0x6cf   : > { %v1537_v63 = vpop.f32.mrb[19].mxu1  ;;  %v1578_v0 = vpop.f32.mrb[23].mxu0  ;;  %3471 = vmatprep.subr.bf16.mxu1 %v3713_v46  ;;  %3493 = vmatprep.subr.bf16.mxu0 %v3714_v47  ;;  %v3735_v41 = vld [vmem:[%s4656_s13 + $0x200] sm:$0xff]   ;;  %v3739_v58 = vld [vmem:[%s4656_s13 + $0x208] sm:$0xff]   ;;  %v3773_v35 = vld [vmem:[%s4656_s13 + $0x350] sm:$0xff]  }
 0x6d0   : > { %v1671_v39 = vmax.f32 %v1535_v33, 0.0  ;;  %v3736_v47 = vld [vmem:[%s4656_s13 + $0x280] sm:$0xff]   ;;  %v3740_v59 = vld [vmem:[%s4656_s13 + $0x288] sm:$0xff]   ;;  %v3744_v63 = vld [vmem:[%s4656_s13 + $0x290] sm:$0xff]  }
 0x6d1   : > { %v3745_v0 = vld [vmem:[%s4656_s13 + $0x258] sm:$0xff]   ;;  %v3770_v33 = vld [vmem:[%s4656_s13 + $0x3c8] sm:$0xff]  }
 0x6d2   : > { %3472 = vmatpush3.bf16.msra.mxu1 %v3715_v60  ;;  %3494 = vmatpush3.bf16.msra.mxu0 %v3716_v61  ;;  %v1687_v52 = vpack.c.bf16 %v1671_v39, %v1671_v39  ;;  %v3741_v60 = vld [vmem:[%s4656_s13 + $0x250] sm:$0xff]   ;;  %v3777_v39 = vld [vmem:[%s4656_s13 + $0x358] sm:$0xff]  }
 0x6d3   : > { %3473 = vmatprep.subr.bf16.mxu1 %v3717_v4  ;;  %3495 = vmatprep.subr.bf16.mxu0 %v3718_v5  ;;  %v3742_v61 = vld [vmem:[%s4656_s13 + $0x2d0] sm:$0xff]   ;;  %v3746_v4 = vld [vmem:[%s4656_s13 + $0x2d8] sm:$0xff]  }
 0x6d4   : > { %v1614_v11 = vpop.f32.mrb[20].mxu1  ;;  %v1655_v12 = vpop.f32.mrb[24].mxu0  ;;  %v3747_v5 = vld [vmem:[%s4656_s13 + $0x218] sm:$0xff]  }
 0x6d5   : > { %v4354_v13 = vadd.f32 %v1614_v11, %v1142_v6  ;;  %v4357_v14 = vadd.f32 %v1655_v12, %v4255_v45  ;;  %v4359_v15 = vpop.f32.mrb[21].mxu1  ;;  %v4361_v16 = vpop.f32.mrb[25].mxu0  ;;  %v1118_v45 = vrot.slane %v4262_v48, %v1117_v43  ;;  %v1138_v43 = vrot.slane %v4250_v44, %v1105_v50  ;;  %v3727_v48 = vld [vmem:[%s4656_s13 + $0x130] sm:$0xff]   ;;  %v3730_v50 = vld [vmem:[%s4656_s13 + $0x1f8] sm:$0xff]   ;;  %v3753_v11 = vld [vmem:[%s4656_s13 + $0x268] sm:$0xff]  }
 0x6d6   : > { %3474 = vmatpush3.bf16.msra.mxu1 %v3719_v7  ;;  %3496 = vmatpush3.bf16.msra.mxu0 %v3720_v8  ;;  %v1618_v17 = vpop.f32.mrb[22].mxu1  ;;  %v1659_v18 = vpop.f32.mrb[26].mxu0  ;;  %v3748_v6 = vld [vmem:[%s4656_s13 + $0x298] sm:$0xff]   ;;  %v3749_v7 = vld [vmem:[%s4656_s13 + $0x260] sm:$0xff]   ;;  %v3754_v12 = vld [vmem:[%s4656_s13 + $0x2e8] sm:$0xff]  }
 0x6d7   : > { %v1619_v24 = vpop.f32.mrb[23].mxu1  ;;  %v1660_v25 = vpop.f32.mrb[27].mxu0  ;;  %3475 = vmatprep.subr.bf16.mxu1 %v3721_v9  ;;  %3497 = vmatprep.subr.bf16.mxu0 %v3722_v10  ;;  %v1492_v32 = vadd.f32 %v4296_v21, %v1118_v45  ;;  %v1576_v34 = vadd.f32 %v1575_v57, %v1138_v43  ;;  %v3732_v21 = vld [vmem:[%s4656_s13 + $0x1b8] sm:$0xff]   ;;  %v3750_v8 = vld [vmem:[%s4656_s13 + $0x2e0] sm:$0xff]   ;;  %v3755_v17 = vld [vmem:[%s4656_s13 + $0x228] sm:$0xff]   ;;  %v1154_v45 = vrot.slane %v4250_v44, %v1121_v3 }
 0x6d8   : > { %v3751_v9 = vld [vmem:[%s4656_s13 + $0x220] sm:$0xff]   ;;  %v3756_v18 = vld [vmem:[%s4656_s13 + $0x2a8] sm:$0xff]   ;;  %v3759_v24 = vld [vmem:[%s4656_s13 + $0x230] sm:$0xff]   ;;  %v1617_v44 = vadd.f32 %v4359_v15, %v1146_v23  ;;  %v1672_v15 = vmax.f32 %v4326_v55, 0.0 }
 0x6d9   : > { %v1668_v36 = vmax.f32 %v1492_v32, 0.0  ;;  %v1673_v40 = vmax.f32 %v1576_v34, 0.0  ;;  %v3752_v10 = vld [vmem:[%s4656_s13 + $0x2a0] sm:$0xff]   ;;  %v3760_v25 = vld [vmem:[%s4656_s13 + $0x2b0] sm:$0xff]   ;;  %v1658_v2 = vadd.f32 %v4361_v16, %v1154_v45  ;;  %v3763_v3 = vld [vmem:[%s4656_s13 + $0x238] sm:$0xff]  }
 0x6da   : > { %3476 = vmatpush3.bf16.msra.mxu1 %v3723_v19  ;;  %3498 = vmatpush3.bf16.msra.mxu0 %v3724_v22  ;;  %v3757_v19 = vld [vmem:[%s4656_s13 + $0x270] sm:$0xff]   ;;  %v3765_v43 = vld [vmem:[%s4656_s13 + $0x340] sm:$0xff]   ;;  %v1688_v55 = vpack.c.bf16 %v1672_v15, %v1672_v15 }
 0x6db   : > { %3477 = vmatprep.subr.bf16.mxu1 %v3725_v26  ;;  %3499 = vmatprep.subr.bf16.mxu0 %v3726_v27  ;;  %v1684_v46 = vpack.c.bf16 %v1668_v36, %v1668_v36  ;;  %v1689_v57 = vpack.c.bf16 %v1673_v40, %v1673_v40  ;;  %v3758_v22 = vld [vmem:[%s4656_s13 + $0x2f0] sm:$0xff]   ;;  %v3761_v26 = vld [vmem:[%s4656_s13 + $0x278] sm:$0xff]   ;;  %v1670_v27 = vmax.f32 %v4324_v54, 0.0  ;;  %v3766_v16 = vld [vmem:[%s4656_s13 + $0x3c0] sm:$0xff]  }
 0x6dc   : > { %v3767_v54 = vld [vmem:[%s4656_s13 + $0x300] sm:$0xff]   ;;  %v3774_v36 = vld [vmem:[%s4656_s13 + $0x3d0] sm:$0xff]   ;;  %v3778_v40 = vld [vmem:[%s4656_s13 + $0x3d8] sm:$0xff]  }
 0x6dd   : > { %v1686_v30 = vpack.c.bf16 %v1670_v27, %v1670_v27  ;;  %v3768_v32 = vld [vmem:[%s4656_s13 + $0x380] sm:$0xff]  }
 0x6de   : > { %3478 = vmatpush3.bf16.msra.mxu1 %v3727_v48  ;;  %3500 = vmatpush3.bf16.msra.mxu0 %v3728_v29  ;;  %v1675_v48 = vmax.f32 %v1617_v44, 0.0  ;;  %v1677_v29 = vmax.f32 %v1658_v2, 0.0 }
 0x6df   : > { %3479 = vmatprep.subr.bf16.mxu1 %v3729_v49  ;;  %3501 = vmatprep.subr.bf16.mxu0 %v3730_v50  ;;  %v3769_v49 = vld [vmem:[%s4656_s13 + $0x348] sm:$0xff]  }
 0x6e0   : > { %v1691_v50 = vpack.c.bf16 %v1675_v48, %v1675_v48  ;;  %v1693_v34 = vpack.c.bf16 %v1677_v29, %v1677_v29 }
 0x6e2   : > { %3480 = vmatpush3.bf16.msra.mxu1 %v3731_v20  ;;  %3502 = vmatpush3.bf16.msra.mxu0 %v3732_v21  ;;  %v3771_v20 = vld [vmem:[%s4656_s13 + $0x308] sm:$0xff]  }
 0x6e3   : > { %3509 = vmatprep.subr.bf16.mxu1 %v3733_v37  ;;  %3531 = vmatprep.subr.bf16.mxu0 %v3734_v38  ;;  %v3772_v21 = vld [vmem:[%s4656_s13 + $0x388] sm:$0xff]   ;;  %v3775_v37 = vld [vmem:[%s4656_s13 + $0x310] sm:$0xff]  }
 0x6e4   : > { %v3776_v38 = vld [vmem:[%s4656_s13 + $0x390] sm:$0xff]  }
 0x6e5   : > { %2838 = vmatmul.mubr.bf16.vlgmr.msra.gmra.mrb[28].mxu1 %v1682_v51  ;;  %2878 = vmatmul.mubr.bf16.vlgmr.msra.gmra.mrb[32].mxu0 %v1684_v46  ;;  %v3780_v51 = vld [vmem:[%s4656_s13 + $0x398] sm:$0xff]   ;;  %v3781_v46 = vld [vmem:[%s4656_s13 + $0x360] sm:$0xff]  }
 0x6e6   : > { %3510 = vmatpush3.bf16.msra.mxu1 %v3735_v41  ;;  %2917 = vmatprep.mubr.bf16.mxu1 %v1687_v52  ;;  %v3779_v41 = vld [vmem:[%s4656_s13 + $0x318] sm:$0xff]   ;;  %v3783_v52 = vld [vmem:[%s4656_s13 + $0x320] sm:$0xff]  }
 0x6e7   : > { %3532 = vmatpush3.bf16.msra.mxu0 %v3736_v47  ;;  %2957 = vmatprep.mubr.bf16.mxu0 %v1689_v57  ;;  %v3782_v47 = vld [vmem:[%s4656_s13 + $0x3e0] sm:$0xff]   ;;  %v3786_v57 = vld [vmem:[%s4656_s13 + $0x3e8] sm:$0xff]  }
 0x6e8   : > { %3511 = vmatprep.subr.bf16.mxu1 %v3737_v53  ;;  %3533 = vmatprep.subr.bf16.mxu0 %v3738_v56  ;;  %v3784_v53 = vld [vmem:[%s4656_s13 + $0x3a0] sm:$0xff]   ;;  %v3785_v56 = vld [vmem:[%s4656_s13 + $0x368] sm:$0xff]  }
 0x6ea   : > { %3512 = vmatpush3.bf16.msra.mxu1 %v3739_v58  ;;  %v3787_v58 = vld [vmem:[%s4656_s13 + $0x328] sm:$0xff]  }
 0x6eb   : > { %3534 = vmatpush3.bf16.msra.mxu0 %v3740_v59  ;;  %3513 = vmatprep.subr.bf16.mxu1 %v3741_v60  ;;  %v3788_v59 = vld [vmem:[%s4656_s13 + $0x3a8] sm:$0xff]   ;;  %v3789_v60 = vld [vmem:[%s4656_s13 + $0x370] sm:$0xff]  }
 0x6ec   : > { %3535 = vmatprep.subr.bf16.mxu0 %v3742_v61  ;;  %v3790_v61 = vld [vmem:[%s4656_s13 + $0x3f0] sm:$0xff]  }
 0x6ee   : > { %3514 = vmatpush3.bf16.msra.mxu1 %v3743_v62  ;;  %v3791_v62 = vld [vmem:[%s4656_s13 + $0x330] sm:$0xff]  }
 0x6ef   : > { %3536 = vmatpush3.bf16.msra.mxu0 %v3744_v63  ;;  %3515 = vmatprep.subr.bf16.mxu1 %v3745_v0  ;;  %v3792_v63 = vld [vmem:[%s4656_s13 + $0x3b0] sm:$0xff]   ;;  %v3793_v0 = vld [vmem:[%s4656_s13 + $0x378] sm:$0xff]  }
 0x6f0   : > { %3537 = vmatprep.subr.bf16.mxu0 %v3746_v4  ;;  %v3794_v4 = vld [vmem:[%s4656_s13 + $0x3f8] sm:$0xff]  }
 0x6f2   : > { %3516 = vmatpush3.bf16.msra.mxu1 %v3747_v5  ;;  %v3795_v5 = vld [vmem:[%s4656_s13 + $0x338] sm:$0xff]  }
 0x6f3   : > { %3538 = vmatpush3.bf16.msra.mxu0 %v3748_v6  ;;  %3517 = vmatprep.subr.bf16.mxu1 %v3749_v7  ;;  %v1674_v6 = vmax.f32 %v4354_v13, 0.0  ;;  %v3796_v7 = vld [vmem:[%s4656_s13 + $0x3b8] sm:$0xff]  }
 0x6f4   : > { %3539 = vmatprep.subr.bf16.mxu0 %v3750_v8  ;;  %v1676_v8 = vmax.f32 %v4357_v14, 0.0 }
 0x6f6   : > { %3518 = vmatpush3.bf16.msra.mxu1 %v3751_v9  ;;  %v1690_v9 = vpack.c.bf16 %v1674_v6, %v1674_v6  ;;  %v3798_v6 = vld [vmem:[%s4660_s17 + $0x8] sm:$0xff]  }
 0x6f7   : > { %3540 = vmatpush3.bf16.msra.mxu0 %v3752_v10  ;;  %3519 = vmatprep.subr.bf16.mxu1 %v3753_v11  ;;  %v1692_v10 = vpack.c.bf16 %v1676_v8, %v1676_v8 }
 0x6f8   : > { %3541 = vmatprep.subr.bf16.mxu0 %v3754_v12  ;;  %v3268_v12 = vld [vmem:[%s4657_s14] ss:$0 sm:$0xff] }
 0x6fa   : > { %3520 = vmatpush3.bf16.msra.mxu1 %v3755_v17 }
 0x6fb   : > { %3542 = vmatpush3.bf16.msra.mxu0 %v3756_v18  ;;  %3521 = vmatprep.subr.bf16.mxu1 %v3757_v19 }
 0x6fc   : > { %3543 = vmatprep.subr.bf16.mxu0 %v3758_v22 }
 0x6fe   : > { %3522 = vmatpush3.bf16.msra.mxu1 %v3759_v24 }
 0x6ff   : > { %3544 = vmatpush3.bf16.msra.mxu0 %v3760_v25  ;;  %3523 = vmatprep.subr.bf16.mxu1 %v3761_v26 }
 0x700   : > { %3545 = vmatprep.subr.bf16.mxu0 %v3762_v42 }
 0x702   : > { %3524 = vmatpush3.bf16.msra.mxu1 %v3763_v3 }
 0x703   : > { %3546 = vmatpush3.bf16.msra.mxu0 %v3764_v28  ;;  %3553 = vmatprep.subr.bf16.mxu1 %v3765_v43 }
 0x704   : > { %3575 = vmatprep.subr.bf16.mxu0 %v3766_v16 }
 0x705   : > { %2918 = vmatmul.mubr.bf16.vlgmr.msra.gmra.mrb[32].mxu1 %v1686_v30 }
 0x706   : > { %2958 = vmatmul.mubr.bf16.vlgmr.msra.gmra.mrb[36].mxu0 %v1688_v55  ;;  %3554 = vmatpush3.bf16.msra.mxu1 %v3767_v54 }
 0x707   : > { %2997 = vmatprep.mubr.bf16.mxu1 %v1691_v50  ;;  %3576 = vmatpush3.bf16.msra.mxu0 %v3768_v32 }
 0x708   : > { %3037 = vmatprep.mubr.bf16.mxu0 %v1693_v34  ;;  %3555 = vmatprep.subr.bf16.mxu1 %v3769_v49 }
 0x709   : > { %3577 = vmatprep.subr.bf16.mxu0 %v3770_v33 }
 0x70a   : > { %3556 = vmatpush3.bf16.msra.mxu1 %v3771_v20 }
 0x70b   : > { %3578 = vmatpush3.bf16.msra.mxu0 %v3772_v21  ;;  %3557 = vmatprep.subr.bf16.mxu1 %v3773_v35 }
 0x70c   : > { %3579 = vmatprep.subr.bf16.mxu0 %v3774_v36 }
 0x70e   : > { %3558 = vmatpush3.bf16.msra.mxu1 %v3775_v37 }
 0x70f   : > { %3580 = vmatpush3.bf16.msra.mxu0 %v3776_v38  ;;  %3559 = vmatprep.subr.bf16.mxu1 %v3777_v39 }
 0x710   : > { %3581 = vmatprep.subr.bf16.mxu0 %v3778_v40 }
 0x712   : > { %3560 = vmatpush3.bf16.msra.mxu1 %v3779_v41 }
 0x713   : > { %3582 = vmatpush3.bf16.msra.mxu0 %v3780_v51  ;;  %3561 = vmatprep.subr.bf16.mxu1 %v3781_v46 }
 0x714   : > { %3583 = vmatprep.subr.bf16.mxu0 %v3782_v47 }
 0x716   : > { %3562 = vmatpush3.bf16.msra.mxu1 %v3783_v52 }
 0x717   : > { %3584 = vmatpush3.bf16.msra.mxu0 %v3784_v53  ;;  %3563 = vmatprep.subr.bf16.mxu1 %v3785_v56 }
 0x718   : > { %3585 = vmatprep.subr.bf16.mxu0 %v3786_v57 }
 0x71a   : > { %3564 = vmatpush3.bf16.msra.mxu1 %v3787_v58 }
 0x71b   : > { %3586 = vmatpush3.bf16.msra.mxu0 %v3788_v59  ;;  %3565 = vmatprep.subr.bf16.mxu1 %v3789_v60 }
 0x71c   : > { %3587 = vmatprep.subr.bf16.mxu0 %v3790_v61 }
 0x71e   : > { %3566 = vmatpush3.bf16.msra.mxu1 %v3791_v62 }
 0x71f   : > { %3588 = vmatpush3.bf16.msra.mxu0 %v3792_v63  ;;  %3567 = vmatprep.subr.bf16.mxu1 %v3793_v0 }
 0x720   : > { %3589 = vmatprep.subr.bf16.mxu0 %v3794_v4 }
 0x722   : > { %3568 = vmatpush3.bf16.msra.mxu1 %v3795_v5  ;;  %v3797_v5 = vld [vmem:[%s4660_s17] sm:$0xff]  }
 0x723   : > { %3590 = vmatpush3.bf16.msra.mxu0 %v3796_v7  ;;  %3642 = vmatprep.subr.bf16.mxu1 %v3817_v1 }
 0x725   : > { %2998 = vmatmul.mubr.bf16.vlgmr.msra.gmra.mrb[36].mxu1 %v1690_v9 }
 0x726   : > { %3038 = vmatmul.mubr.bf16.vlgmr.msra.gmra.mrb[40].mxu0 %v1692_v10  ;;  %3646 = vmatprep.mubr.msk.bf16.mxu1 %vm3818_vm0, %v3817_v1  ;;  %v3397_v10 = vld [vmem:[%s4658_s15] ss:$0 sm:$0xff] }
 0x727   : > { %3643 = vmatpush3.bf16.msra.mxu1 %v3797_v5 }
 0x728   : > { %3644 = vmatprep.subr.bf16.mxu1 %v3817_v1  ;;  %v3399_v1 = vld [vmem:[%s4661_s18] ss:$0 sm:$0xff] }
 0x72b   : > { %3645 = vmatpush3.bf16.msra.mxu1 %v3798_v6 }
 0x798   : > { %v3437_v13 = vpop.f32.mrb[24].mxu1  ;;  %v3459_v11 = vpop.f32.mrb[28].mxu0 }
 0x799   : > { %v3438_v17 = vpop.f32.mrb[25].mxu1  ;;  %v3460_v14 = vpop.f32.mrb[29].mxu0 }
 0x79a   : > { %v3439_v18 = vadd.f32 %v3438_v17, %v3437_v13  ;;  %v3461_v19 = vadd.f32 %v3460_v14, %v3459_v11  ;;  %v3440_v22 = vpop.f32.mrb[26].mxu1  ;;  %v3462_v23 = vpop.f32.mrb[30].mxu0  ;;  %v3398_v11 = vld [vmem:[%s4659_s16] ss:$0 sm:$0xff] }
 0x79b   : > { %v3441_v45 = vpop.f32.mrb[27].mxu1  ;;  %v3463_v24 = vpop.f32.mrb[31].mxu0 }
 0x79c   : > { %v2760_v25 = vadd.f32 %v3439_v18, %v3268_v12 }
 0x79e   : > { %v2800_v26 = vadd.f32 %v3461_v19, %v2760_v25 }
 0x7b8   : > { %v3481_v42 = vpop.f32.mrb[28].mxu1  ;;  %v3503_v44 = vpop.f32.mrb[32].mxu0 }
 0x7b9   : > { %v3482_v2 = vpop.f32.mrb[29].mxu1  ;;  %v3504_v3 = vpop.f32.mrb[33].mxu0 }
 0x7ba   : > { %v3483_v27 = vadd.f32 %v3482_v2, %v3481_v42  ;;  %v3505_v28 = vadd.f32 %v3504_v3, %v3503_v44  ;;  %v3484_v43 = vpop.f32.mrb[30].mxu1  ;;  %v3506_v15 = vpop.f32.mrb[34].mxu0 }
 0x7bb   : > { %v3485_v16 = vpop.f32.mrb[31].mxu1  ;;  %v3507_v48 = vpop.f32.mrb[35].mxu0 }
 0x7bc   : > { %v2840_v29 = vadd.f32 %v3483_v27, %v2800_v26 }
 0x7be   : > { %v2880_v54 = vadd.f32 %v3505_v28, %v2840_v29 }
 0x7d8   : > { %v3525_v30 = vpop.f32.mrb[32].mxu1 }
 0x7d9   : > { %v3547_v32 = vpop.f32.mrb[36].mxu0  ;;  %v3526_v55 = vpop.f32.mrb[33].mxu1 }
 0x7da   : > { %v3527_v49 = vadd.f32 %v3526_v55, %v3525_v30  ;;  %v3548_v50 = vpop.f32.mrb[37].mxu0  ;;  %v3528_v33 = vpop.f32.mrb[34].mxu1 }
 0x7db   : > { %v3549_v34 = vadd.f32 %v3548_v50, %v3547_v32  ;;  %v3550_v20 = vpop.f32.mrb[38].mxu0  ;;  %v3529_v21 = vpop.f32.mrb[35].mxu1 }
 0x7dc   : > { %v2920_v35 = vadd.f32 %v3527_v49, %v2880_v54  ;;  %v3551_v36 = vpop.f32.mrb[39].mxu0 }
 0x7de   : > { %v2960_v37 = vadd.f32 %v3549_v34, %v2920_v35 }
 0x7f8   : > { %v3569_v38 = vpop.f32.mrb[36].mxu1 }
 0x7f9   : > { %v3591_v39 = vpop.f32.mrb[40].mxu0  ;;  %v3570_v40 = vpop.f32.mrb[37].mxu1 }
 0x7fa   : > { %v3571_v41 = vadd.f32 %v3570_v40, %v3569_v38  ;;  %v3592_v51 = vpop.f32.mrb[41].mxu0  ;;  %v3572_v46 = vpop.f32.mrb[38].mxu1 }
 0x7fb   : > { %v3593_v47 = vadd.f32 %v3592_v51, %v3591_v39  ;;  %v3594_v52 = vpop.f32.mrb[42].mxu0  ;;  %v3573_v53 = vpop.f32.mrb[39].mxu1 }
 0x7fc   : > { %v3000_v56 = vadd.f32 %v3571_v41, %v2960_v37  ;;  %v3595_v57 = vpop.f32.mrb[43].mxu0 }
 0x7fe   : > { %v3040_v58 = vadd.f32 %v3593_v47, %v3000_v56 }
 0x800   : > { %v3045_v59 = vadd.f32 %v3040_v58, %v4066_v31 }
 0x802   : > { %v3048_v60 = vsel %vm624_vm1, %v3045_v59, 0.0 }
 0x803   : > { %3049 = vadd.xlane.f32.xlu0 %v3048_v60 }
 0x890   : > { %v3050_v61 = vpop.xlane.xlu0 %3049 }
 0x891   : > { %v3051_v62 = vmul.f32 0.03125, %v3050_v61 }
 0x893   : > { %v3052_v63 = vsub.f32 %v3045_v59, %v3051_v62 }
 0x895   : > { %v3053_v0 = vmul.f32 %v3052_v63, %v3052_v63 }
 0x897   : > { %v3054_v4 = vsel %vm624_vm1, %v3053_v0, 0.0 }
 0x898   : > { %3055 = vadd.xlane.f32.xlu1 %v3054_v4 }
 0x925   : > { %v3056_v31 = vpop.xlane.xlu1 %3055 }
 0x926   : > { %v3057_v7 = vmul.f32 0.03125, %v3056_v31 }
 0x928   : > { %v3058_v8 = vadd.f32 1e-05, %v3057_v7 }
 0x92a   : > { %3805 = vrsqrt.f32 %v3058_v8 }
 0x934   : > { %v3806_v9 = vpop.eup %3805 }
 0x935   : > { %v3060_v13 = vmul.f32 %v3806_v9, %v3052_v63 }
 0x937   : > { %v3067_v12 = vmul.f32 %v3397_v10, %v3060_v13 }
 0x939   : > { %v3074_v17 = vadd.f32 %v3398_v11, %v3067_v12 }
 0x93b   : > { %v3075_v14 = vpack.c.bf16 %v3074_v17, %v3074_v17 }
 0x93d   : > { %3647 = vmatmul.mubr.msk.bf16.vlgmr.msra.gmra.mrb[40].mxu1 %vm624_vm1, %v3075_v14 }
 0xa10   : > { %v3136_v18 = vpop.f32.mrb[40].mxu1 }
 0xa11   : > { %v3137_v19 = vadd.f32 %v3399_v1, %v3136_v18  ;;  %v3648_v22 = vpop.f32.mrb[41].mxu1 }
 0xa12   : > { %v3139_v23 = vpop.f32.mrb[42].mxu1 }
 0xa13   : > { %v3142_v45 = vmul.f32 0.5, %v3137_v19  ;;  %v3649_v24 = vpop.f32.mrb[43].mxu1 }
 0xa15   : > { %3807 = vtanh.f32 %v3142_v45 }
 0xa1f   : > { %v3808_v25 = vpop.eup %3807 }
 0xa20   : > { %v3144_v26 = vadd.f32 1.0, %v3808_v25 }
 0xa22   : > { %v3145_v42 = vmul.f32 0.5, %v3144_v26 }
 0xa24   : > { %3146 = vst [vmem:[%s597_s25] sm:$0xff] %v3145_v42 }
 0xa25 PF: > { %s29_s0 = sadd.s32 1, %s3815_s0  }
 0xa26   : > { %p26_p4 = scmp.ge.s32.totalorder %s29_s0, 4  }
 0xa28   :  { %28 = sbr.rel (!%p26_p4) target bundleno = 5 (0x5), region = 126 }

</bundles_post_ra>
